<compile_context>
chip_gen: v6e
topology: v6e:2x2x1
jax: 0.10.0
libtpu: 0.0.40
codegen_flags: <defaults>
</compile_context>

<pallas_src>
import math

import jax
import jax.numpy as jnp
from jax import lax
from jax.experimental import pallas as pl
from jax.experimental.pallas import tpu as pltpu

# ----------------------------- tiny-BERT config ------------------------------
B, S, H = 2, 8, 32          # batch, sequence length, hidden size
BS = B * S
N_HEADS = 2
D_HEAD = H // N_HEADS       # 16
FFN = 64                    # intermediate size
VOCAB = 128                 # == 128 lanes -> one-hot gather is a single matmul
TYPE_VOCAB = 2
MAX_POS = 16
N_LAYERS = 2
N_LABELS = 6
LN_EPS = 1e-12
ATTN_SCALE = 1.0 / math.sqrt(D_HEAD)
LANES = 128

VMEM_SPEC = pl.BlockSpec(memory_space=pltpu.MemorySpace.VMEM)


# --------------------- static layout of the single weight slab ----------------
def _layer_entries(l):
    p = f"l{l}_"
    return [
        (p + "wqkv", (H, 3 * H)), (p + "bqkv", (1, 3 * H)),
        (p + "wo", (H, H)), (p + "bo", (1, H)),
        (p + "ln1_g", (1, H)), (p + "ln1_b", (1, H)),
        (p + "w1", (H, FFN)), (p + "b1", (1, FFN)),
        (p + "w2", (FFN, H)), (p + "b2", (1, H)),
        (p + "ln2_g", (1, H)), (p + "ln2_b", (1, H)),
    ]


def _build_layout():
    entries = [
        ("word_emb", (VOCAB, H)),
        ("pos_contrib", (BS, H)),        # pos_emb[:S] tiled over the batch (constant)
        ("type_emb", (TYPE_VOCAB, H)),
        ("emb_ln_g", (1, H)), ("emb_ln_b", (1, H)),
        ("block_mask", (BS, BS)),        # 1.0 on same-batch blocks, else 0.0
    ]
    for l in range(N_LAYERS):
        entries += _layer_entries(l)
    entries += [
        ("pool_w", (H, H)), ("pool_b", (1, H)),
        ("cls_w", (H, N_LABELS)), ("cls_b", (1, N_LABELS)),
    ]
    off, r = {}, 0
    for name, (nr, nc) in entries:
        off[name] = (r, nr, nc)
        r += -(-nr // 8) * 8             # align every tensor to an 8-sublane boundary
    return entries, off, r


_SLAB_ENTRIES, _OFF, _SLAB_ROWS = _build_layout()   # _SLAB_ROWS == 712


# ------------------------------ fused kernel ----------------------------------
def _fused_forward_kernel(tok_ref, mask_ref, slab_ref, out_ref):
    """embeddings -> LN -> N encoder layers -> pooler -> classifier softmax."""
    f32 = jnp.float32

    def W(name):                          # static view into the packed weight slab
        r0, nr, nc = _OFF[name]
        return slab_ref[r0:r0 + nr, :nc]

    def mm(a, b):
        return jnp.dot(a, b, preferred_element_type=f32)

    def layernorm(x, g, b):
        mu = jnp.mean(x, axis=-1, keepdims=True)
        var = jnp.mean(jnp.square(x - mu), axis=-1, keepdims=True)
        return (x - mu) * lax.rsqrt(var + LN_EPS) * g + b

    # ---- embeddings: one-hot word gather + constant pos + 2-row type lerp ----
    tok = tok_ref[...]                                   # (BS, 2) int32
    ids = tok[:, 0:1]                                    # (BS, 1) input ids
    tt = tok[:, 1:2].astype(f32)                         # (BS, 1) token type ids
    onehot = (lax.broadcasted_iota(jnp.int32, (BS, VOCAB), 1) == ids).astype(f32)
    type_tab = W("type_emb")                             # (2, H)
    emb = (mm(onehot, W("word_emb")) + W("pos_contrib")
           + type_tab[0:1, :] + tt * (type_tab[1:2, :] - type_tab[0:1, :]))
    x = layernorm(emb, W("emb_ln_g"), W("emb_ln_b"))     # (BS, H)

    # ---- additive attention bias: same-batch block-diagonal + key padding,
    #      computed once and reused by every layer and head ----
    mask_keys = mask_ref[...]                            # (1, BS), 1.0 = valid key
    attn_bias = (W("block_mask") * mask_keys - 1.0) * 1e9   # (BS, BS): 0 or -1e9

    for l in range(N_LAYERS):
        p = f"l{l}_"
        # fused Q|K|V projection: one (BS,32)x(32,96) matmul per layer
        qkv = mm(x, W(p + "wqkv")) + W(p + "bqkv")       # (BS, 3H)
        ctx_heads = []
        for h in range(N_HEADS):
            qh = qkv[:, h * D_HEAD:(h + 1) * D_HEAD]             # (BS, 16)
            kh = qkv[:, H + h * D_HEAD:H + (h + 1) * D_HEAD]
            vh = qkv[:, 2 * H + h * D_HEAD:2 * H + (h + 1) * D_HEAD]
            s = lax.dot_general(qh, kh, (((1,), (1,)), ((), ())),
                                preferred_element_type=f32) * ATTN_SCALE + attn_bias
            s = s - jnp.max(s, axis=-1, keepdims=True)
            e = jnp.exp(s)
            # approx reciprocal = EUP op; ~2^-12 rel. error vs exact softmax.
            pr = e * pl.reciprocal(jnp.sum(e, axis=-1, keepdims=True), approx=True)
            ctx_heads.append(mm(pr, vh))                 # (BS, D_HEAD)
        ctx = jnp.concatenate(ctx_heads, axis=-1)        # (BS, H), heads on lanes
        attn_out = mm(ctx, W(p + "wo")) + W(p + "bo")    # single un-split Wo matmul
        x = layernorm(attn_out + x, W(p + "ln1_g"), W(p + "ln1_b"))

        ff = mm(x, W(p + "w1")) + W(p + "b1")
        # tanh-approx GELU (EUP-friendly); exact-erf GELU differs at ~1e-3.
        ff = jax.nn.gelu(ff, approximate=True)
        ff = mm(ff, W(p + "w2")) + W(p + "b2")
        x = layernorm(ff + x, W(p + "ln2_g"), W(p + "ln2_b"))

    # ---- batched tail: both [CLS] rows at once, single store ----
    cls_x = jnp.concatenate([x[b * S:b * S + 1, :] for b in range(B)], axis=0)  # (B, H)
    pooled = jnp.tanh(mm(cls_x, W("pool_w")) + W("pool_b"))
    logits = mm(pooled, W("cls_w")) + W("cls_b")          # (B, 6)
    logits = logits - jnp.max(logits, axis=-1, keepdims=True)
    e = jnp.exp(logits)
    out_ref[...] = e / jnp.sum(e, axis=-1, keepdims=True)  # exact final softmax


# ------------------------------ parameter init --------------------------------
def init_params(key):
    def nrm(k, shape, std=0.02):
        return (std * jax.random.normal(k, shape)).astype(jnp.float32)

    keys = iter(jax.random.split(key, 64))
    params = {
        "word_emb": nrm(next(keys), (VOCAB, H)),
        "pos_emb": nrm(next(keys), (MAX_POS, H)),
        "type_emb": nrm(next(keys), (TYPE_VOCAB, H)),
        "emb_ln_g": jnp.ones((H,), jnp.float32),
        "emb_ln_b": jnp.zeros((H,), jnp.float32),
        "pool_w": nrm(next(keys), (H, H)),
        "pool_b": jnp.zeros((H,), jnp.float32),
        "cls_w": nrm(next(keys), (H, N_LABELS)),
        "cls_b": jnp.zeros((N_LABELS,), jnp.float32),
        "layers": [],
    }
    for _ in range(N_LAYERS):
        params["layers"].append({
            "wq": nrm(next(keys), (H, H)), "bq": jnp.zeros((H,), jnp.float32),
            "wk": nrm(next(keys), (H, H)), "bk": jnp.zeros((H,), jnp.float32),
            "wv": nrm(next(keys), (H, H)), "bv": jnp.zeros((H,), jnp.float32),
            "wo": nrm(next(keys), (H, H)), "bo": jnp.zeros((H,), jnp.float32),
            "attn_ln_g": jnp.ones((H,), jnp.float32),
            "attn_ln_b": jnp.zeros((H,), jnp.float32),
            "w_ff1": nrm(next(keys), (H, FFN)),
            "b_ff1": jnp.zeros((FFN,), jnp.float32),
            "w_ff2": nrm(next(keys), (FFN, H)),
            "b_ff2": jnp.zeros((H,), jnp.float32),
            "ffn_ln_g": jnp.ones((H,), jnp.float32),
            "ffn_ln_b": jnp.zeros((H,), jnp.float32),
        })
    return params


def pack_params(params):
    """Pack every weight/constant into a single (712, 128) f32 VMEM slab."""
    vals = {
        "word_emb": params["word_emb"],
        "pos_contrib": jnp.tile(params["pos_emb"][:S], (B, 1)),
        "type_emb": params["type_emb"],
        "emb_ln_g": params["emb_ln_g"], "emb_ln_b": params["emb_ln_b"],
        "block_mask": jnp.kron(jnp.eye(B, dtype=jnp.float32),
                               jnp.ones((S, S), jnp.float32)),
        "pool_w": params["pool_w"], "pool_b": params["pool_b"],
        "cls_w": params["cls_w"], "cls_b": params["cls_b"],
    }
    for l, L in enumerate(params["layers"]):
        p = f"l{l}_"
        vals[p + "wqkv"] = jnp.concatenate([L["wq"], L["wk"], L["wv"]], axis=1)
        vals[p + "bqkv"] = jnp.concatenate([L["bq"], L["bk"], L["bv"]], axis=0)
        vals[p + "wo"] = L["wo"]; vals[p + "bo"] = L["bo"]
        vals[p + "ln1_g"] = L["attn_ln_g"]; vals[p + "ln1_b"] = L["attn_ln_b"]
        vals[p + "w1"] = L["w_ff1"]; vals[p + "b1"] = L["b_ff1"]
        vals[p + "w2"] = L["w_ff2"]; vals[p + "b2"] = L["b_ff2"]
        vals[p + "ln2_g"] = L["ffn_ln_g"]; vals[p + "ln2_b"] = L["ffn_ln_b"]

    slab = jnp.zeros((_SLAB_ROWS, LANES), jnp.float32)
    for name, (nr, nc) in _SLAB_ENTRIES:
        r0, _, _ = _OFF[name]
        t = jnp.asarray(vals[name], jnp.float32)
        if t.ndim == 1:
            t = t.reshape(1, -1)
        slab = slab.at[r0:r0 + nr, :nc].set(t)
    return slab


# --------------------------- pure-JAX reference --------------------------------
def reference_forward(params, input_ids, token_type_ids, attention_mask):
    emb = (params["word_emb"][input_ids]
           + params["pos_emb"][jnp.arange(S)][None, :, :]
           + params["type_emb"][token_type_ids]).astype(jnp.float32)

    def ln(x, g, b):
        mu = x.mean(-1, keepdims=True)
        var = ((x - mu) ** 2).mean(-1, keepdims=True)
        return (x - mu) / jnp.sqrt(var + LN_EPS) * g + b

    x = ln(emb, params["emb_ln_g"], params["emb_ln_b"])
    bias = ((attention_mask.astype(jnp.float32) - 1.0) * 1e9)[:, None, None, :]
    for L in params["layers"]:
        def split(t):
            return t.reshape(B, S, N_HEADS, D_HEAD).transpose(0, 2, 1, 3)
        qh = split(x @ L["wq"] + L["bq"])
        kh = split(x @ L["wk"] + L["bk"])
        vh = split(x @ L["wv"] + L["bv"])
        s = jnp.einsum("bhqd,bhkd->bhqk", qh, kh) * ATTN_SCALE + bias
        p = jax.nn.softmax(s, axis=-1)
        ctx = jnp.einsum("bhqk,bhkd->bhqd", p, vh).transpose(0, 2, 1, 3).reshape(B, S, H)
        x = ln(ctx @ L["wo"] + L["bo"] + x, L["attn_ln_g"], L["attn_ln_b"])
        ff = jax.nn.gelu(x @ L["w_ff1"] + L["b_ff1"], approximate=True)
        ff = ff @ L["w_ff2"] + L["b_ff2"]
        x = ln(ff + x, L["ffn_ln_g"], L["ffn_ln_b"])
    pooled = jnp.tanh(x[:, 0, :] @ params["pool_w"] + params["pool_b"])
    logits = pooled @ params["cls_w"] + params["cls_b"]
    return jax.nn.softmax(logits, axis=-1)


# ------------------------------- forward pass ---------------------------------
@jax.jit
def mnist_sum2_forward(slab, input_ids, token_type_ids, attention_mask):
    tok = jnp.stack([input_ids.reshape(-1), token_type_ids.reshape(-1)],
                    axis=-1).astype(jnp.int32)                 # (BS, 2)
    mask = attention_mask.reshape(1, -1).astype(jnp.float32)   # (1, BS)
    probs = pl.pallas_call(
        _fused_forward_kernel,
        out_shape=jax.ShapeDtypeStruct((B, N_LABELS), jnp.float32),
        in_specs=[VMEM_SPEC, VMEM_SPEC, VMEM_SPEC],
        out_specs=VMEM_SPEC,
    )(tok, mask, slab)
    # scallopy: sum_2(a) :- digit_1(a) with output mapping [(0,)..(5,)] is an
    # exact identity over the 6 class probabilities for any provenance.
    # TODO(synk): general (non-identity) scallopy programs have no clean Pallas
    # equivalent; only this identity rule is reproduced.
    return probs


# ----------------------------------- main --------------------------------------
if __name__ == "__main__":
    root = jax.random.PRNGKey(0)
    k_params, k_ids = jax.random.split(root)

    params = init_params(k_params)
    slab = pack_params(params)

    # x = (input_ids, token_type_ids, attention_mask), each (B, S)
    input_ids = jax.random.randint(k_ids, (B, S), 0, VOCAB, dtype=jnp.int32)
    token_type_ids = jnp.zeros((B, S), jnp.int32)
    attention_mask = jnp.ones((B, S), jnp.int32).at[1, S - 2:].set(0)  # pad tail

    out = mnist_sum2_forward(slab, input_ids, token_type_ids, attention_mask)
    out = jax.block_until_ready(out)

    ref = reference_forward(params, input_ids, token_type_ids, attention_mask)

    assert out.shape == (B, N_LABELS)
    assert bool(jnp.all(jnp.isfinite(out)))
    assert bool(jnp.allclose(jnp.sum(out, axis=1), 1.0, atol=1e-5))
    assert bool(jnp.allclose(out, ref, atol=2e-3))
    print("KERNEL_OK")
</pallas_src>

<mosaic_0001>
module attributes {stable_mosaic.version = 11 : i64} {
  func.func @_fused_forward_kernel(%arg0: memref<16x2xi32, #tpu.memory_space<vmem>>, %arg1: memref<1x16xf32, #tpu.memory_space<vmem>>, %arg2: memref<712x128xf32, #tpu.memory_space<vmem>>, %arg3: memref<2x6xf32, #tpu.memory_space<vmem>>) attributes {dimension_semantics = [], scalar_prefetch = 0 : i64, scratch_operands = 0 : i64, tpu.core_type = #tpu.core_type<tc>} {
    %c0 = arith.constant 0 : index
    %c0_0 = arith.constant 0 : index
    %0 = vector.load %arg0[%c0, %c0_0] : memref<16x2xi32, #tpu.memory_space<vmem>>, vector<16x2xi32>
    %1 = vector.extract_strided_slice %0 {offsets = [0, 0], sizes = [16, 1], strides = [1, 1]} : vector<16x2xi32> to vector<16x1xi32>
    %2 = vector.extract_strided_slice %0 {offsets = [0, 1], sizes = [16, 1], strides = [1, 1]} : vector<16x2xi32> to vector<16x1xi32>
    %3 = arith.sitofp %2 : vector<16x1xi32> to vector<16x1xf32>
    %4 = tpu.iota {dimensions = array<i32: 1>} : vector<16x128xi32>
    %5 = vector.broadcast %1 : vector<16x1xi32> to vector<16x128xi32>
    %6 = arith.cmpi eq, %4, %5 : vector<16x128xi32>
    %7 = arith.extui %6 : vector<16x128xi1> to vector<16x128xi32>
    %8 = arith.sitofp %7 : vector<16x128xi32> to vector<16x128xf32>
    %c144 = arith.constant 144 : index
    %c0_1 = arith.constant 0 : index
    %9 = vector.load %arg2[%c144, %c0_1] : memref<712x128xf32, #tpu.memory_space<vmem>>, vector<2x32xf32>
    %c0_2 = arith.constant 0 : index
    %c0_3 = arith.constant 0 : index
    %10 = vector.load %arg2[%c0_2, %c0_3] : memref<712x128xf32, #tpu.memory_space<vmem>>, vector<128x32xf32>
    %cst = arith.constant dense<0.000000e+00> : vector<16x32xf32>
    %11 = tpu.matmul %8, %10, %cst {dimension_numbers = #tpu.dot_dimension_numbers<[1], [0], [0], [1], [0, 0, 1, 1], [], []>} : vector<16x128xf32>, vector<128x32xf32>, vector<16x32xf32> -> vector<16x32xf32>
    %c128 = arith.constant 128 : index
    %c0_4 = arith.constant 0 : index
    %12 = vector.load %arg2[%c128, %c0_4] : memref<712x128xf32, #tpu.memory_space<vmem>>, vector<16x32xf32>
    %13 = arith.addf %11, %12 : vector<16x32xf32>
    %14 = vector.extract_strided_slice %9 {offsets = [0, 0], sizes = [1, 32], strides = [1, 1]} : vector<2x32xf32> to vector<1x32xf32>
    %15 = vector.broadcast %14 : vector<1x32xf32> to vector<16x32xf32>
    %16 = arith.addf %13, %15 : vector<16x32xf32>
    %17 = vector.extract_strided_slice %9 {offsets = [1, 0], sizes = [1, 32], strides = [1, 1]} : vector<2x32xf32> to vector<1x32xf32>
    %18 = vector.extract_strided_slice %9 {offsets = [0, 0], sizes = [1, 32], strides = [1, 1]} : vector<2x32xf32> to vector<1x32xf32>
    %19 = arith.subf %17, %18 : vector<1x32xf32>
    %20 = vector.broadcast %3 : vector<16x1xf32> to vector<16x32xf32>
    %21 = vector.broadcast %19 : vector<1x32xf32> to vector<16x32xf32>
    %22 = arith.mulf %20, %21 : vector<16x32xf32>
    %23 = arith.addf %16, %22 : vector<16x32xf32>
    %c152 = arith.constant 152 : index
    %c0_5 = arith.constant 0 : index
    %24 = vector.load %arg2[%c152, %c0_5] : memref<712x128xf32, #tpu.memory_space<vmem>>, vector<1x32xf32>
    %c160 = arith.constant 160 : index
    %c0_6 = arith.constant 0 : index
    %25 = vector.load %arg2[%c160, %c0_6] : memref<712x128xf32, #tpu.memory_space<vmem>>, vector<1x32xf32>
    %cst_7 = arith.constant dense<0.000000e+00> : vector<16xf32>
    %26 = vector.multi_reduction <add>, %23, %cst_7 [1] : vector<16x32xf32> to vector<16xf32>
    %27 = vector.shape_cast %26 : vector<16xf32> to vector<16x1xf32>
    %cst_8 = arith.constant 3.200000e+01 : f32
    %28 = vector.broadcast %cst_8 : f32 to vector<16x1xf32>
    %29 = arith.divf %27, %28 : vector<16x1xf32>
    %30 = vector.broadcast %29 : vector<16x1xf32> to vector<16x32xf32>
    %31 = arith.subf %23, %30 : vector<16x32xf32>
    %32 = arith.mulf %31, %31 : vector<16x32xf32>
    %cst_9 = arith.constant dense<0.000000e+00> : vector<16xf32>
    %33 = vector.multi_reduction <add>, %32, %cst_9 [1] : vector<16x32xf32> to vector<16xf32>
    %34 = vector.shape_cast %33 : vector<16xf32> to vector<16x1xf32>
    %cst_10 = arith.constant 3.200000e+01 : f32
    %35 = vector.broadcast %cst_10 : f32 to vector<16x1xf32>
    %36 = arith.divf %34, %35 : vector<16x1xf32>
    %37 = vector.broadcast %29 : vector<16x1xf32> to vector<16x32xf32>
    %38 = arith.subf %23, %37 : vector<16x32xf32>
    %cst_11 = arith.constant 9.99999996E-13 : f32
    %39 = vector.broadcast %cst_11 : f32 to vector<16x1xf32>
    %40 = arith.addf %36, %39 : vector<16x1xf32>
    %41 = math.rsqrt %40 : vector<16x1xf32>
    %42 = vector.broadcast %41 : vector<16x1xf32> to vector<16x32xf32>
    %43 = arith.mulf %38, %42 : vector<16x32xf32>
    %44 = vector.broadcast %24 : vector<1x32xf32> to vector<16x32xf32>
    %45 = arith.mulf %43, %44 : vector<16x32xf32>
    %46 = vector.broadcast %25 : vector<1x32xf32> to vector<16x32xf32>
    %47 = arith.addf %45, %46 : vector<16x32xf32>
    %c0_12 = arith.constant 0 : index
    %c0_13 = arith.constant 0 : index
    %48 = vector.load %arg1[%c0_12, %c0_13] : memref<1x16xf32, #tpu.memory_space<vmem>>, vector<1x16xf32>
    %c168 = arith.constant 168 : index
    %c0_14 = arith.constant 0 : index
    %49 = vector.load %arg2[%c168, %c0_14] : memref<712x128xf32, #tpu.memory_space<vmem>>, vector<16x16xf32>
    %50 = vector.broadcast %48 : vector<1x16xf32> to vector<16x16xf32>
    %51 = arith.mulf %49, %50 : vector<16x16xf32>
    %cst_15 = arith.constant 1.000000e+00 : f32
    %52 = vector.broadcast %cst_15 : f32 to vector<16x16xf32>
    %53 = arith.subf %51, %52 : vector<16x16xf32>
    %cst_16 = arith.constant 1.000000e+09 : f32
    %54 = vector.broadcast %cst_16 : f32 to vector<16x16xf32>
    %55 = arith.mulf %53, %54 : vector<16x16xf32>
    %c184 = arith.constant 184 : index
    %c0_17 = arith.constant 0 : index
    %56 = vector.load %arg2[%c184, %c0_17] : memref<712x128xf32, #tpu.memory_space<vmem>>, vector<32x96xf32>
    %cst_18 = arith.constant dense<0.000000e+00> : vector<16x96xf32>
    %57 = tpu.matmul %47, %56, %cst_18 {dimension_numbers = #tpu.dot_dimension_numbers<[1], [0], [0], [1], [0, 0, 1, 1], [], []>} : vector<16x32xf32>, vector<32x96xf32>, vector<16x96xf32> -> vector<16x96xf32>
    %c216 = arith.constant 216 : index
    %c0_19 = arith.constant 0 : index
    %58 = vector.load %arg2[%c216, %c0_19] : memref<712x128xf32, #tpu.memory_space<vmem>>, vector<1x96xf32>
    %59 = vector.broadcast %58 : vector<1x96xf32> to vector<16x96xf32>
    %60 = arith.addf %57, %59 : vector<16x96xf32>
    %61 = vector.extract_strided_slice %60 {offsets = [0, 0], sizes = [16, 16], strides = [1, 1]} : vector<16x96xf32> to vector<16x16xf32>
    %62 = vector.extract_strided_slice %60 {offsets = [0, 32], sizes = [16, 16], strides = [1, 1]} : vector<16x96xf32> to vector<16x16xf32>
    %63 = vector.extract_strided_slice %60 {offsets = [0, 64], sizes = [16, 16], strides = [1, 1]} : vector<16x96xf32> to vector<16x16xf32>
    %cst_20 = arith.constant dense<0.000000e+00> : vector<16x16xf32>
    %64 = tpu.matmul %61, %62, %cst_20 {dimension_numbers = #tpu.dot_dimension_numbers<[1], [1], [0], [0], [0, 0, 1, 0], [], []>} : vector<16x16xf32>, vector<16x16xf32>, vector<16x16xf32> -> vector<16x16xf32>
    %cst_21 = arith.constant 2.500000e-01 : f32
    %65 = vector.broadcast %cst_21 : f32 to vector<16x16xf32>
    %66 = arith.mulf %64, %65 : vector<16x16xf32>
    %67 = arith.addf %66, %55 : vector<16x16xf32>
    %cst_22 = arith.constant dense<0xFF800000> : vector<16xf32>
    %68 = vector.multi_reduction <maximumf>, %67, %cst_22 [1] : vector<16x16xf32> to vector<16xf32>
    %69 = vector.shape_cast %68 : vector<16xf32> to vector<16x1xf32>
    %70 = vector.broadcast %69 : vector<16x1xf32> to vector<16x16xf32>
    %71 = arith.subf %67, %70 : vector<16x16xf32>
    %72 = math.exp %71 : vector<16x16xf32>
    %cst_23 = arith.constant dense<0.000000e+00> : vector<16xf32>
    %73 = vector.multi_reduction <add>, %72, %cst_23 [1] : vector<16x16xf32> to vector<16xf32>
    %74 = vector.shape_cast %73 : vector<16xf32> to vector<16x1xf32>
    %75 = tpu.reciprocal %74 {approx = true} : vector<16x1xf32> -> vector<16x1xf32>
    %76 = vector.broadcast %75 : vector<16x1xf32> to vector<16x16xf32>
    %77 = arith.mulf %72, %76 : vector<16x16xf32>
    %cst_24 = arith.constant dense<0.000000e+00> : vector<16x16xf32>
    %78 = tpu.matmul %77, %63, %cst_24 {dimension_numbers = #tpu.dot_dimension_numbers<[1], [0], [0], [1], [0, 0, 1, 1], [], []>} : vector<16x16xf32>, vector<16x16xf32>, vector<16x16xf32> -> vector<16x16xf32>
    %79 = vector.extract_strided_slice %60 {offsets = [0, 16], sizes = [16, 16], strides = [1, 1]} : vector<16x96xf32> to vector<16x16xf32>
    %80 = vector.extract_strided_slice %60 {offsets = [0, 48], sizes = [16, 16], strides = [1, 1]} : vector<16x96xf32> to vector<16x16xf32>
    %81 = vector.extract_strided_slice %60 {offsets = [0, 80], sizes = [16, 16], strides = [1, 1]} : vector<16x96xf32> to vector<16x16xf32>
    %cst_25 = arith.constant dense<0.000000e+00> : vector<16x16xf32>
    %82 = tpu.matmul %79, %80, %cst_25 {dimension_numbers = #tpu.dot_dimension_numbers<[1], [1], [0], [0], [0, 0, 1, 0], [], []>} : vector<16x16xf32>, vector<16x16xf32>, vector<16x16xf32> -> vector<16x16xf32>
    %cst_26 = arith.constant 2.500000e-01 : f32
    %83 = vector.broadcast %cst_26 : f32 to vector<16x16xf32>
    %84 = arith.mulf %82, %83 : vector<16x16xf32>
    %85 = arith.addf %84, %55 : vector<16x16xf32>
    %cst_27 = arith.constant dense<0xFF800000> : vector<16xf32>
    %86 = vector.multi_reduction <maximumf>, %85, %cst_27 [1] : vector<16x16xf32> to vector<16xf32>
    %87 = vector.shape_cast %86 : vector<16xf32> to vector<16x1xf32>
    %88 = vector.broadcast %87 : vector<16x1xf32> to vector<16x16xf32>
    %89 = arith.subf %85, %88 : vector<16x16xf32>
    %90 = math.exp %89 : vector<16x16xf32>
    %cst_28 = arith.constant dense<0.000000e+00> : vector<16xf32>
    %91 = vector.multi_reduction <add>, %90, %cst_28 [1] : vector<16x16xf32> to vector<16xf32>
    %92 = vector.shape_cast %91 : vector<16xf32> to vector<16x1xf32>
    %93 = tpu.reciprocal %92 {approx = true} : vector<16x1xf32> -> vector<16x1xf32>
    %94 = vector.broadcast %93 : vector<16x1xf32> to vector<16x16xf32>
    %95 = arith.mulf %90, %94 : vector<16x16xf32>
    %cst_29 = arith.constant dense<0.000000e+00> : vector<16x16xf32>
    %96 = tpu.matmul %95, %81, %cst_29 {dimension_numbers = #tpu.dot_dimension_numbers<[1], [0], [0], [1], [0, 0, 1, 1], [], []>} : vector<16x16xf32>, vector<16x16xf32>, vector<16x16xf32> -> vector<16x16xf32>
    %97 = tpu.concatenate %78, %96 in 1 : vector<16x16xf32>, vector<16x16xf32> -> vector<16x32xf32>
    %c224 = arith.constant 224 : index
    %c0_30 = arith.constant 0 : index
    %98 = vector.load %arg2[%c224, %c0_30] : memref<712x128xf32, #tpu.memory_space<vmem>>, vector<32x32xf32>
    %cst_31 = arith.constant dense<0.000000e+00> : vector<16x32xf32>
    %99 = tpu.matmul %97, %98, %cst_31 {dimension_numbers = #tpu.dot_dimension_numbers<[1], [0], [0], [1], [0, 0, 1, 1], [], []>} : vector<16x32xf32>, vector<32x32xf32>, vector<16x32xf32> -> vector<16x32xf32>
    %c256 = arith.constant 256 : index
    %c0_32 = arith.constant 0 : index
    %100 = vector.load %arg2[%c256, %c0_32] : memref<712x128xf32, #tpu.memory_space<vmem>>, vector<1x32xf32>
    %101 = vector.broadcast %100 : vector<1x32xf32> to vector<16x32xf32>
    %102 = arith.addf %99, %101 : vector<16x32xf32>
    %103 = arith.addf %102, %47 : vector<16x32xf32>
    %c264 = arith.constant 264 : index
    %c0_33 = arith.constant 0 : index
    %104 = vector.load %arg2[%c264, %c0_33] : memref<712x128xf32, #tpu.memory_space<vmem>>, vector<1x32xf32>
    %c272 = arith.constant 272 : index
    %c0_34 = arith.constant 0 : index
    %105 = vector.load %arg2[%c272, %c0_34] : memref<712x128xf32, #tpu.memory_space<vmem>>, vector<1x32xf32>
    %cst_35 = arith.constant dense<0.000000e+00> : vector<16xf32>
    %106 = vector.multi_reduction <add>, %103, %cst_35 [1] : vector<16x32xf32> to vector<16xf32>
    %107 = vector.shape_cast %106 : vector<16xf32> to vector<16x1xf32>
    %cst_36 = arith.constant 3.200000e+01 : f32
    %108 = vector.broadcast %cst_36 : f32 to vector<16x1xf32>
    %109 = arith.divf %107, %108 : vector<16x1xf32>
    %110 = vector.broadcast %109 : vector<16x1xf32> to vector<16x32xf32>
    %111 = arith.subf %103, %110 : vector<16x32xf32>
    %112 = arith.mulf %111, %111 : vector<16x32xf32>
    %cst_37 = arith.constant dense<0.000000e+00> : vector<16xf32>
    %113 = vector.multi_reduction <add>, %112, %cst_37 [1] : vector<16x32xf32> to vector<16xf32>
    %114 = vector.shape_cast %113 : vector<16xf32> to vector<16x1xf32>
    %cst_38 = arith.constant 3.200000e+01 : f32
    %115 = vector.broadcast %cst_38 : f32 to vector<16x1xf32>
    %116 = arith.divf %114, %115 : vector<16x1xf32>
    %117 = vector.broadcast %109 : vector<16x1xf32> to vector<16x32xf32>
    %118 = arith.subf %103, %117 : vector<16x32xf32>
    %cst_39 = arith.constant 9.99999996E-13 : f32
    %119 = vector.broadcast %cst_39 : f32 to vector<16x1xf32>
    %120 = arith.addf %116, %119 : vector<16x1xf32>
    %121 = math.rsqrt %120 : vector<16x1xf32>
    %122 = vector.broadcast %121 : vector<16x1xf32> to vector<16x32xf32>
    %123 = arith.mulf %118, %122 : vector<16x32xf32>
    %124 = vector.broadcast %104 : vector<1x32xf32> to vector<16x32xf32>
    %125 = arith.mulf %123, %124 : vector<16x32xf32>
    %126 = vector.broadcast %105 : vector<1x32xf32> to vector<16x32xf32>
    %127 = arith.addf %125, %126 : vector<16x32xf32>
    %c280 = arith.constant 280 : index
    %c0_40 = arith.constant 0 : index
    %128 = vector.load %arg2[%c280, %c0_40] : memref<712x128xf32, #tpu.memory_space<vmem>>, vector<32x64xf32>
    %cst_41 = arith.constant dense<0.000000e+00> : vector<16x64xf32>
    %129 = tpu.matmul %127, %128, %cst_41 {dimension_numbers = #tpu.dot_dimension_numbers<[1], [0], [0], [1], [0, 0, 1, 1], [], []>} : vector<16x32xf32>, vector<32x64xf32>, vector<16x64xf32> -> vector<16x64xf32>
    %c312 = arith.constant 312 : index
    %c0_42 = arith.constant 0 : index
    %130 = vector.load %arg2[%c312, %c0_42] : memref<712x128xf32, #tpu.memory_space<vmem>>, vector<1x64xf32>
    %131 = vector.broadcast %130 : vector<1x64xf32> to vector<16x64xf32>
    %132 = arith.addf %129, %131 : vector<16x64xf32>
    %133 = arith.mulf %132, %132 : vector<16x64xf32>
    %134 = arith.mulf %132, %133 : vector<16x64xf32>
    %cst_43 = arith.constant 4.471500e-02 : f32
    %135 = vector.broadcast %cst_43 : f32 to vector<16x64xf32>
    %136 = arith.mulf %135, %134 : vector<16x64xf32>
    %137 = arith.addf %132, %136 : vector<16x64xf32>
    %cst_44 = arith.constant 0.797884583 : f32
    %138 = vector.broadcast %cst_44 : f32 to vector<16x64xf32>
    %139 = arith.mulf %138, %137 : vector<16x64xf32>
    %140 = math.tanh %139 : vector<16x64xf32>
    %cst_45 = arith.constant 1.000000e+00 : f32
    %141 = vector.broadcast %cst_45 : f32 to vector<16x64xf32>
    %142 = arith.addf %141, %140 : vector<16x64xf32>
    %cst_46 = arith.constant 5.000000e-01 : f32
    %143 = vector.broadcast %cst_46 : f32 to vector<16x64xf32>
    %144 = arith.mulf %143, %142 : vector<16x64xf32>
    %145 = arith.mulf %132, %144 : vector<16x64xf32>
    %c320 = arith.constant 320 : index
    %c0_47 = arith.constant 0 : index
    %146 = vector.load %arg2[%c320, %c0_47] : memref<712x128xf32, #tpu.memory_space<vmem>>, vector<64x32xf32>
    %cst_48 = arith.constant dense<0.000000e+00> : vector<16x32xf32>
    %147 = tpu.matmul %145, %146, %cst_48 {dimension_numbers = #tpu.dot_dimension_numbers<[1], [0], [0], [1], [0, 0, 1, 1], [], []>} : vector<16x64xf32>, vector<64x32xf32>, vector<16x32xf32> -> vector<16x32xf32>
    %c384 = arith.constant 384 : index
    %c0_49 = arith.constant 0 : index
    %148 = vector.load %arg2[%c384, %c0_49] : memref<712x128xf32, #tpu.memory_space<vmem>>, vector<1x32xf32>
    %149 = vector.broadcast %148 : vector<1x32xf32> to vector<16x32xf32>
    %150 = arith.addf %147, %149 : vector<16x32xf32>
    %151 = arith.addf %150, %127 : vector<16x32xf32>
    %c392 = arith.constant 392 : index
    %c0_50 = arith.constant 0 : index
    %152 = vector.load %arg2[%c392, %c0_50] : memref<712x128xf32, #tpu.memory_space<vmem>>, vector<1x32xf32>
    %c400 = arith.constant 400 : index
    %c0_51 = arith.constant 0 : index
    %153 = vector.load %arg2[%c400, %c0_51] : memref<712x128xf32, #tpu.memory_space<vmem>>, vector<1x32xf32>
    %cst_52 = arith.constant dense<0.000000e+00> : vector<16xf32>
    %154 = vector.multi_reduction <add>, %151, %cst_52 [1] : vector<16x32xf32> to vector<16xf32>
    %155 = vector.shape_cast %154 : vector<16xf32> to vector<16x1xf32>
    %cst_53 = arith.constant 3.200000e+01 : f32
    %156 = vector.broadcast %cst_53 : f32 to vector<16x1xf32>
    %157 = arith.divf %155, %156 : vector<16x1xf32>
    %158 = vector.broadcast %157 : vector<16x1xf32> to vector<16x32xf32>
    %159 = arith.subf %151, %158 : vector<16x32xf32>
    %160 = arith.mulf %159, %159 : vector<16x32xf32>
    %cst_54 = arith.constant dense<0.000000e+00> : vector<16xf32>
    %161 = vector.multi_reduction <add>, %160, %cst_54 [1] : vector<16x32xf32> to vector<16xf32>
    %162 = vector.shape_cast %161 : vector<16xf32> to vector<16x1xf32>
    %cst_55 = arith.constant 3.200000e+01 : f32
    %163 = vector.broadcast %cst_55 : f32 to vector<16x1xf32>
    %164 = arith.divf %162, %163 : vector<16x1xf32>
    %165 = vector.broadcast %157 : vector<16x1xf32> to vector<16x32xf32>
    %166 = arith.subf %151, %165 : vector<16x32xf32>
    %cst_56 = arith.constant 9.99999996E-13 : f32
    %167 = vector.broadcast %cst_56 : f32 to vector<16x1xf32>
    %168 = arith.addf %164, %167 : vector<16x1xf32>
    %169 = math.rsqrt %168 : vector<16x1xf32>
    %170 = vector.broadcast %169 : vector<16x1xf32> to vector<16x32xf32>
    %171 = arith.mulf %166, %170 : vector<16x32xf32>
    %172 = vector.broadcast %152 : vector<1x32xf32> to vector<16x32xf32>
    %173 = arith.mulf %171, %172 : vector<16x32xf32>
    %174 = vector.broadcast %153 : vector<1x32xf32> to vector<16x32xf32>
    %175 = arith.addf %173, %174 : vector<16x32xf32>
    %c408 = arith.constant 408 : index
    %c0_57 = arith.constant 0 : index
    %176 = vector.load %arg2[%c408, %c0_57] : memref<712x128xf32, #tpu.memory_space<vmem>>, vector<32x96xf32>
    %cst_58 = arith.constant dense<0.000000e+00> : vector<16x96xf32>
    %177 = tpu.matmul %175, %176, %cst_58 {dimension_numbers = #tpu.dot_dimension_numbers<[1], [0], [0], [1], [0, 0, 1, 1], [], []>} : vector<16x32xf32>, vector<32x96xf32>, vector<16x96xf32> -> vector<16x96xf32>
    %c440 = arith.constant 440 : index
    %c0_59 = arith.constant 0 : index
    %178 = vector.load %arg2[%c440, %c0_59] : memref<712x128xf32, #tpu.memory_space<vmem>>, vector<1x96xf32>
    %179 = vector.broadcast %178 : vector<1x96xf32> to vector<16x96xf32>
    %180 = arith.addf %177, %179 : vector<16x96xf32>
    %181 = vector.extract_strided_slice %180 {offsets = [0, 0], sizes = [16, 16], strides = [1, 1]} : vector<16x96xf32> to vector<16x16xf32>
    %182 = vector.extract_strided_slice %180 {offsets = [0, 32], sizes = [16, 16], strides = [1, 1]} : vector<16x96xf32> to vector<16x16xf32>
    %183 = vector.extract_strided_slice %180 {offsets = [0, 64], sizes = [16, 16], strides = [1, 1]} : vector<16x96xf32> to vector<16x16xf32>
    %cst_60 = arith.constant dense<0.000000e+00> : vector<16x16xf32>
    %184 = tpu.matmul %181, %182, %cst_60 {dimension_numbers = #tpu.dot_dimension_numbers<[1], [1], [0], [0], [0, 0, 1, 0], [], []>} : vector<16x16xf32>, vector<16x16xf32>, vector<16x16xf32> -> vector<16x16xf32>
    %cst_61 = arith.constant 2.500000e-01 : f32
    %185 = vector.broadcast %cst_61 : f32 to vector<16x16xf32>
    %186 = arith.mulf %184, %185 : vector<16x16xf32>
    %187 = arith.addf %186, %55 : vector<16x16xf32>
    %cst_62 = arith.constant dense<0xFF800000> : vector<16xf32>
    %188 = vector.multi_reduction <maximumf>, %187, %cst_62 [1] : vector<16x16xf32> to vector<16xf32>
    %189 = vector.shape_cast %188 : vector<16xf32> to vector<16x1xf32>
    %190 = vector.broadcast %189 : vector<16x1xf32> to vector<16x16xf32>
    %191 = arith.subf %187, %190 : vector<16x16xf32>
    %192 = math.exp %191 : vector<16x16xf32>
    %cst_63 = arith.constant dense<0.000000e+00> : vector<16xf32>
    %193 = vector.multi_reduction <add>, %192, %cst_63 [1] : vector<16x16xf32> to vector<16xf32>
    %194 = vector.shape_cast %193 : vector<16xf32> to vector<16x1xf32>
    %195 = tpu.reciprocal %194 {approx = true} : vector<16x1xf32> -> vector<16x1xf32>
    %196 = vector.broadcast %195 : vector<16x1xf32> to vector<16x16xf32>
    %197 = arith.mulf %192, %196 : vector<16x16xf32>
    %cst_64 = arith.constant dense<0.000000e+00> : vector<16x16xf32>
    %198 = tpu.matmul %197, %183, %cst_64 {dimension_numbers = #tpu.dot_dimension_numbers<[1], [0], [0], [1], [0, 0, 1, 1], [], []>} : vector<16x16xf32>, vector<16x16xf32>, vector<16x16xf32> -> vector<16x16xf32>
    %199 = vector.extract_strided_slice %180 {offsets = [0, 16], sizes = [16, 16], strides = [1, 1]} : vector<16x96xf32> to vector<16x16xf32>
    %200 = vector.extract_strided_slice %180 {offsets = [0, 48], sizes = [16, 16], strides = [1, 1]} : vector<16x96xf32> to vector<16x16xf32>
    %201 = vector.extract_strided_slice %180 {offsets = [0, 80], sizes = [16, 16], strides = [1, 1]} : vector<16x96xf32> to vector<16x16xf32>
    %cst_65 = arith.constant dense<0.000000e+00> : vector<16x16xf32>
    %202 = tpu.matmul %199, %200, %cst_65 {dimension_numbers = #tpu.dot_dimension_numbers<[1], [1], [0], [0], [0, 0, 1, 0], [], []>} : vector<16x16xf32>, vector<16x16xf32>, vector<16x16xf32> -> vector<16x16xf32>
    %cst_66 = arith.constant 2.500000e-01 : f32
    %203 = vector.broadcast %cst_66 : f32 to vector<16x16xf32>
    %204 = arith.mulf %202, %203 : vector<16x16xf32>
    %205 = arith.addf %204, %55 : vector<16x16xf32>
    %cst_67 = arith.constant dense<0xFF800000> : vector<16xf32>
    %206 = vector.multi_reduction <maximumf>, %205, %cst_67 [1] : vector<16x16xf32> to vector<16xf32>
    %207 = vector.shape_cast %206 : vector<16xf32> to vector<16x1xf32>
    %208 = vector.broadcast %207 : vector<16x1xf32> to vector<16x16xf32>
    %209 = arith.subf %205, %208 : vector<16x16xf32>
    %210 = math.exp %209 : vector<16x16xf32>
    %cst_68 = arith.constant dense<0.000000e+00> : vector<16xf32>
    %211 = vector.multi_reduction <add>, %210, %cst_68 [1] : vector<16x16xf32> to vector<16xf32>
    %212 = vector.shape_cast %211 : vector<16xf32> to vector<16x1xf32>
    %213 = tpu.reciprocal %212 {approx = true} : vector<16x1xf32> -> vector<16x1xf32>
    %214 = vector.broadcast %213 : vector<16x1xf32> to vector<16x16xf32>
    %215 = arith.mulf %210, %214 : vector<16x16xf32>
    %cst_69 = arith.constant dense<0.000000e+00> : vector<16x16xf32>
    %216 = tpu.matmul %215, %201, %cst_69 {dimension_numbers = #tpu.dot_dimension_numbers<[1], [0], [0], [1], [0, 0, 1, 1], [], []>} : vector<16x16xf32>, vector<16x16xf32>, vector<16x16xf32> -> vector<16x16xf32>
    %217 = tpu.concatenate %198, %216 in 1 : vector<16x16xf32>, vector<16x16xf32> -> vector<16x32xf32>
    %c448 = arith.constant 448 : index
    %c0_70 = arith.constant 0 : index
    %218 = vector.load %arg2[%c448, %c0_70] : memref<712x128xf32, #tpu.memory_space<vmem>>, vector<32x32xf32>
    %cst_71 = arith.constant dense<0.000000e+00> : vector<16x32xf32>
    %219 = tpu.matmul %217, %218, %cst_71 {dimension_numbers = #tpu.dot_dimension_numbers<[1], [0], [0], [1], [0, 0, 1, 1], [], []>} : vector<16x32xf32>, vector<32x32xf32>, vector<16x32xf32> -> vector<16x32xf32>
    %c480 = arith.constant 480 : index
    %c0_72 = arith.constant 0 : index
    %220 = vector.load %arg2[%c480, %c0_72] : memref<712x128xf32, #tpu.memory_space<vmem>>, vector<1x32xf32>
    %221 = vector.broadcast %220 : vector<1x32xf32> to vector<16x32xf32>
    %222 = arith.addf %219, %221 : vector<16x32xf32>
    %223 = arith.addf %222, %175 : vector<16x32xf32>
    %c488 = arith.constant 488 : index
    %c0_73 = arith.constant 0 : index
    %224 = vector.load %arg2[%c488, %c0_73] : memref<712x128xf32, #tpu.memory_space<vmem>>, vector<1x32xf32>
    %c496 = arith.constant 496 : index
    %c0_74 = arith.constant 0 : index
    %225 = vector.load %arg2[%c496, %c0_74] : memref<712x128xf32, #tpu.memory_space<vmem>>, vector<1x32xf32>
    %cst_75 = arith.constant dense<0.000000e+00> : vector<16xf32>
    %226 = vector.multi_reduction <add>, %223, %cst_75 [1] : vector<16x32xf32> to vector<16xf32>
    %227 = vector.shape_cast %226 : vector<16xf32> to vector<16x1xf32>
    %cst_76 = arith.constant 3.200000e+01 : f32
    %228 = vector.broadcast %cst_76 : f32 to vector<16x1xf32>
    %229 = arith.divf %227, %228 : vector<16x1xf32>
    %230 = vector.broadcast %229 : vector<16x1xf32> to vector<16x32xf32>
    %231 = arith.subf %223, %230 : vector<16x32xf32>
    %232 = arith.mulf %231, %231 : vector<16x32xf32>
    %cst_77 = arith.constant dense<0.000000e+00> : vector<16xf32>
    %233 = vector.multi_reduction <add>, %232, %cst_77 [1] : vector<16x32xf32> to vector<16xf32>
    %234 = vector.shape_cast %233 : vector<16xf32> to vector<16x1xf32>
    %cst_78 = arith.constant 3.200000e+01 : f32
    %235 = vector.broadcast %cst_78 : f32 to vector<16x1xf32>
    %236 = arith.divf %234, %235 : vector<16x1xf32>
    %237 = vector.broadcast %229 : vector<16x1xf32> to vector<16x32xf32>
    %238 = arith.subf %223, %237 : vector<16x32xf32>
    %cst_79 = arith.constant 9.99999996E-13 : f32
    %239 = vector.broadcast %cst_79 : f32 to vector<16x1xf32>
    %240 = arith.addf %236, %239 : vector<16x1xf32>
    %241 = math.rsqrt %240 : vector<16x1xf32>
    %242 = vector.broadcast %241 : vector<16x1xf32> to vector<16x32xf32>
    %243 = arith.mulf %238, %242 : vector<16x32xf32>
    %244 = vector.broadcast %224 : vector<1x32xf32> to vector<16x32xf32>
    %245 = arith.mulf %243, %244 : vector<16x32xf32>
    %246 = vector.broadcast %225 : vector<1x32xf32> to vector<16x32xf32>
    %247 = arith.addf %245, %246 : vector<16x32xf32>
    %c504 = arith.constant 504 : index
    %c0_80 = arith.constant 0 : index
    %248 = vector.load %arg2[%c504, %c0_80] : memref<712x128xf32, #tpu.memory_space<vmem>>, vector<32x64xf32>
    %cst_81 = arith.constant dense<0.000000e+00> : vector<16x64xf32>
    %249 = tpu.matmul %247, %248, %cst_81 {dimension_numbers = #tpu.dot_dimension_numbers<[1], [0], [0], [1], [0, 0, 1, 1], [], []>} : vector<16x32xf32>, vector<32x64xf32>, vector<16x64xf32> -> vector<16x64xf32>
    %c536 = arith.constant 536 : index
    %c0_82 = arith.constant 0 : index
    %250 = vector.load %arg2[%c536, %c0_82] : memref<712x128xf32, #tpu.memory_space<vmem>>, vector<1x64xf32>
    %251 = vector.broadcast %250 : vector<1x64xf32> to vector<16x64xf32>
    %252 = arith.addf %249, %251 : vector<16x64xf32>
    %253 = arith.mulf %252, %252 : vector<16x64xf32>
    %254 = arith.mulf %252, %253 : vector<16x64xf32>
    %cst_83 = arith.constant 4.471500e-02 : f32
    %255 = vector.broadcast %cst_83 : f32 to vector<16x64xf32>
    %256 = arith.mulf %255, %254 : vector<16x64xf32>
    %257 = arith.addf %252, %256 : vector<16x64xf32>
    %cst_84 = arith.constant 0.797884583 : f32
    %258 = vector.broadcast %cst_84 : f32 to vector<16x64xf32>
    %259 = arith.mulf %258, %257 : vector<16x64xf32>
    %260 = math.tanh %259 : vector<16x64xf32>
    %cst_85 = arith.constant 1.000000e+00 : f32
    %261 = vector.broadcast %cst_85 : f32 to vector<16x64xf32>
    %262 = arith.addf %261, %260 : vector<16x64xf32>
    %cst_86 = arith.constant 5.000000e-01 : f32
    %263 = vector.broadcast %cst_86 : f32 to vector<16x64xf32>
    %264 = arith.mulf %263, %262 : vector<16x64xf32>
    %265 = arith.mulf %252, %264 : vector<16x64xf32>
    %c544 = arith.constant 544 : index
    %c0_87 = arith.constant 0 : index
    %266 = vector.load %arg2[%c544, %c0_87] : memref<712x128xf32, #tpu.memory_space<vmem>>, vector<64x32xf32>
    %cst_88 = arith.constant dense<0.000000e+00> : vector<16x32xf32>
    %267 = tpu.matmul %265, %266, %cst_88 {dimension_numbers = #tpu.dot_dimension_numbers<[1], [0], [0], [1], [0, 0, 1, 1], [], []>} : vector<16x64xf32>, vector<64x32xf32>, vector<16x32xf32> -> vector<16x32xf32>
    %c608 = arith.constant 608 : index
    %c0_89 = arith.constant 0 : index
    %268 = vector.load %arg2[%c608, %c0_89] : memref<712x128xf32, #tpu.memory_space<vmem>>, vector<1x32xf32>
    %269 = vector.broadcast %268 : vector<1x32xf32> to vector<16x32xf32>
    %270 = arith.addf %267, %269 : vector<16x32xf32>
    %271 = arith.addf %270, %247 : vector<16x32xf32>
    %c616 = arith.constant 616 : index
    %c0_90 = arith.constant 0 : index
    %272 = vector.load %arg2[%c616, %c0_90] : memref<712x128xf32, #tpu.memory_space<vmem>>, vector<1x32xf32>
    %c624 = arith.constant 624 : index
    %c0_91 = arith.constant 0 : index
    %273 = vector.load %arg2[%c624, %c0_91] : memref<712x128xf32, #tpu.memory_space<vmem>>, vector<1x32xf32>
    %cst_92 = arith.constant dense<0.000000e+00> : vector<16xf32>
    %274 = vector.multi_reduction <add>, %271, %cst_92 [1] : vector<16x32xf32> to vector<16xf32>
    %275 = vector.shape_cast %274 : vector<16xf32> to vector<16x1xf32>
    %cst_93 = arith.constant 3.200000e+01 : f32
    %276 = vector.broadcast %cst_93 : f32 to vector<16x1xf32>
    %277 = arith.divf %275, %276 : vector<16x1xf32>
    %278 = vector.broadcast %277 : vector<16x1xf32> to vector<16x32xf32>
    %279 = arith.subf %271, %278 : vector<16x32xf32>
    %280 = arith.mulf %279, %279 : vector<16x32xf32>
    %cst_94 = arith.constant dense<0.000000e+00> : vector<16xf32>
    %281 = vector.multi_reduction <add>, %280, %cst_94 [1] : vector<16x32xf32> to vector<16xf32>
    %282 = vector.shape_cast %281 : vector<16xf32> to vector<16x1xf32>
    %cst_95 = arith.constant 3.200000e+01 : f32
    %283 = vector.broadcast %cst_95 : f32 to vector<16x1xf32>
    %284 = arith.divf %282, %283 : vector<16x1xf32>
    %285 = vector.broadcast %277 : vector<16x1xf32> to vector<16x32xf32>
    %286 = arith.subf %271, %285 : vector<16x32xf32>
    %cst_96 = arith.constant 9.99999996E-13 : f32
    %287 = vector.broadcast %cst_96 : f32 to vector<16x1xf32>
    %288 = arith.addf %284, %287 : vector<16x1xf32>
    %289 = math.rsqrt %288 : vector<16x1xf32>
    %290 = vector.broadcast %289 : vector<16x1xf32> to vector<16x32xf32>
    %291 = arith.mulf %286, %290 : vector<16x32xf32>
    %292 = vector.broadcast %272 : vector<1x32xf32> to vector<16x32xf32>
    %293 = arith.mulf %291, %292 : vector<16x32xf32>
    %294 = vector.broadcast %273 : vector<1x32xf32> to vector<16x32xf32>
    %295 = arith.addf %293, %294 : vector<16x32xf32>
    %296 = vector.extract_strided_slice %295 {offsets = [0, 0], sizes = [1, 32], strides = [1, 1]} : vector<16x32xf32> to vector<1x32xf32>
    %297 = vector.extract_strided_slice %295 {offsets = [8, 0], sizes = [1, 32], strides = [1, 1]} : vector<16x32xf32> to vector<1x32xf32>
    %298 = tpu.concatenate %296, %297 in 0 : vector<1x32xf32>, vector<1x32xf32> -> vector<2x32xf32>
    %c632 = arith.constant 632 : index
    %c0_97 = arith.constant 0 : index
    %299 = vector.load %arg2[%c632, %c0_97] : memref<712x128xf32, #tpu.memory_space<vmem>>, vector<32x32xf32>
    %cst_98 = arith.constant dense<0.000000e+00> : vector<2x32xf32>
    %300 = tpu.matmul %298, %299, %cst_98 {dimension_numbers = #tpu.dot_dimension_numbers<[1], [0], [0], [1], [0, 0, 1, 1], [], []>} : vector<2x32xf32>, vector<32x32xf32>, vector<2x32xf32> -> vector<2x32xf32>
    %c664 = arith.constant 664 : index
    %c0_99 = arith.constant 0 : index
    %301 = vector.load %arg2[%c664, %c0_99] : memref<712x128xf32, #tpu.memory_space<vmem>>, vector<1x32xf32>
    %302 = vector.broadcast %301 : vector<1x32xf32> to vector<2x32xf32>
    %303 = arith.addf %300, %302 : vector<2x32xf32>
    %304 = math.tanh %303 : vector<2x32xf32>
    %c672 = arith.constant 672 : index
    %c0_100 = arith.constant 0 : index
    %305 = vector.load %arg2[%c672, %c0_100] : memref<712x128xf32, #tpu.memory_space<vmem>>, vector<32x6xf32>
    %cst_101 = arith.constant dense<0.000000e+00> : vector<2x6xf32>
    %306 = tpu.matmul %304, %305, %cst_101 {dimension_numbers = #tpu.dot_dimension_numbers<[1], [0], [0], [1], [0, 0, 1, 1], [], []>} : vector<2x32xf32>, vector<32x6xf32>, vector<2x6xf32> -> vector<2x6xf32>
    %c704 = arith.constant 704 : index
    %c0_102 = arith.constant 0 : index
    %307 = vector.load %arg2[%c704, %c0_102] : memref<712x128xf32, #tpu.memory_space<vmem>>, vector<1x6xf32>
    %308 = vector.broadcast %307 : vector<1x6xf32> to vector<2x6xf32>
    %309 = arith.addf %306, %308 : vector<2x6xf32>
    %cst_103 = arith.constant dense<0xFF800000> : vector<2xf32>
    %310 = vector.multi_reduction <maximumf>, %309, %cst_103 [1] : vector<2x6xf32> to vector<2xf32>
    %311 = vector.shape_cast %310 : vector<2xf32> to vector<2x1xf32>
    %312 = vector.broadcast %311 : vector<2x1xf32> to vector<2x6xf32>
    %313 = arith.subf %309, %312 : vector<2x6xf32>
    %314 = math.exp %313 : vector<2x6xf32>
    %cst_104 = arith.constant dense<0.000000e+00> : vector<2xf32>
    %315 = vector.multi_reduction <add>, %314, %cst_104 [1] : vector<2x6xf32> to vector<2xf32>
    %316 = vector.shape_cast %315 : vector<2xf32> to vector<2x1xf32>
    %317 = vector.broadcast %316 : vector<2x1xf32> to vector<2x6xf32>
    %318 = arith.divf %314, %317 : vector<2x6xf32>
    %c0_105 = arith.constant 0 : index
    %c0_106 = arith.constant 0 : index
    %319 = vector.load %arg3[%c0_105, %c0_106] : memref<2x6xf32, #tpu.memory_space<vmem>>, vector<2x6xf32>
    tpu.vector_store %arg3[%c0_105, %c0_106], %318 {strides = array<i32>} : memref<2x6xf32, #tpu.memory_space<vmem>>, vector<2x6xf32>,
    return
  }
}

</mosaic_0001>

<bundles_post_ra>
// kernel: mnist_sum2_forward.1
= control target key start
LH: loop header
LB: loop body
LE: loop exit
PB: predicated region body
PF: predicated region fallthrough
CT: control target
= control target key end

     0   :  { %8 = vsyncpa [#allocation3], 0  ;;  %s2963_s0 = inlined_call_operand.vmem [shape: s32[16,2], index: 0, kind: input, shape index: {}]   ;;  %s2964_s1 = inlined_call_operand.vmem [shape: f32[1,16], index: 1, kind: input, shape index: {}]   ;;  %s2965_s2 = inlined_call_operand.hbm [shape: f32[712,128], index: 2, kind: input, shape index: {}]   ;;  %s2966_s3 = inlined_call_operand.hbm [shape: f32[2,6], index: 3, kind: output, shape index: {}]  }
   0x1   :  { %9 = vsyncpa [#allocation4], 0  ;;  %s2720_s12 = smov [#allocation2]  }
   0x2   :  { %s19_s13 = sshll.u32 %s2720_s12, 4  ;;  %s20_s13 = int_to_ptr.vmem [resolvable:$true] %s19_s13 }
   0x3   :  { %s2684_s14 = scalar_lea.vmem %s20_s13, 11392  ;;  %p2689_p1 = scmp.lt.s32.totalorder %s20_s13, %s20_s13 }
   0x4   :  { %p2685_p0 = scmp.ne.s32.totalorder %s20_s13, %s2684_s14  ;;  %p2690_p2 = scmp.lt.s32.totalorder %s2684_s14, %s2684_s14 }
   0x6   :  { %p2691_p3 = por %p2690_p2, %p2689_p1 }
   0x8   :  { %p2692_p4 = pnand %p2691_p3, %p2685_p0 }
   0xa   :  { %2695 = shalt.err (!%p2692_p4)
}
   0xb   :  { %s2721_s15 = smov 128   ;;  %s2722_s16 = smov 8  }
   0xc   :  { %25 = dma.hbm_to_vmem [thread:$0]  %s2965_s2, 11392, %s20_s13, [#allocation3], %s2721_s15, %s2721_s15, %s2722_s16  }
   0xd   :  { %2716 = dma.done.wait [#allocation3], 11392  }
   0xe   :  { %2717 = vsyncadd [#allocation3], 4294955904  ;;  %v2723_v0 = vmov 0   ;;  %v29_v1 = vld [vmem:[%s2963_s0] sm:$0xff]  ;;  %v63_v2 = vld [vmem:[#allocation2 + $0x78] sm:$0xff]  ;;  %v2724_v7 = vmov 1   ;;  %v33_v22 = vlaneseq }
   0xf   :  { %2607 = vset.pattern.permute.xlu0 %v2723_v0  ;;  %2375 = vmatprep.subr.mxu0 %v63_v2  ;;  %v62_v3 = vld [vmem:[#allocation2 + $0x70] sm:$0xff]  ;;  %v30_v4 = vld [vmem:[%s2963_s0 + $0x8] sm:$0xff]  ;;  %v31_v6 = vcvt.s32.f32 %v29_v1  ;;  %v60_v9 = vld [vmem:[#allocation2 + $0x60] sm:$0xff]  ;;  %v2725_v25 = vmov 1.0   ;;  %vm171_vm2 = vcmask 261120   ;;  %vm322_vm3 = vcmask 130048  }
  0x10   :  { %36 = vperm.xlu0 %2607, %v29_v1   ;;  %2376 = vmatpush3.msra.mxu0 %v63_v2  ;;  %v61_v5 = vld [vmem:[#allocation2 + $0x68] sm:$0xff]  ;;  %v32_v8 = vcvt.s32.f32 %v30_v4  ;;  %v59_v10 = vld [vmem:[#allocation2 + $0x58] sm:$0xff]  ;;  %v58_v11 = vld [vmem:[#allocation2 + $0x50] sm:$0xff]  ;;  %v34_v23 = vand.u32 127, %v33_v22  ;;  %v142_v28 = vshrl.u32 %v33_v22, 7  ;;  %s2726_s0 = smov 96  }
  0x11   :  { %2377 = vmatprep.subr.mxu0 %v62_v3  ;;  %2608 = vset.pattern.permute.xlu1 %v2724_v7  ;;  %v57_v12 = vld [vmem:[#allocation2 + $0x48] sm:$0xff]  ;;  %v56_v13 = vld [vmem:[#allocation2 + $0x40] sm:$0xff]  ;;  %v55_v14 = vld [vmem:[#allocation2 + $0x38] sm:$0xff]  ;;  %s2728_s24 = smov 80   ;;  %s2729_s25 = smov 112   ;;  %vm986_vm4 = vcmask 523264  }
  0x12   :  { %2378 = vmatpush3.msra.mxu0 %v62_v3  ;;  %153 = vperm.xlu1 %2608, %v31_v6   ;;  %v54_v15 = vld [vmem:[#allocation2 + $0x30] sm:$0xff]  ;;  %v53_v16 = vld [vmem:[#allocation2 + $0x28] sm:$0xff]  ;;  %v52_v17 = vld [vmem:[#allocation2 + $0x20] sm:$0xff]  ;;  %v163_v32 = vsub.s32 1, %v142_v28  ;;  %v143_v33 = vsub.s32 0, %v142_v28  ;;  %s2730_s26 = smov 48  }
  0x13   :  { %2379 = vmatprep.subr.mxu0 %v61_v5  ;;  %v51_v18 = vld [vmem:[#allocation2 + $0x18] sm:$0xff]  ;;  %v50_v19 = vld [vmem:[#allocation2 + $0x10] sm:$0xff]  ;;  %v49_v20 = vld [vmem:[#allocation2 + $0x8] sm:$0xff]  ;;  %s2731_s27 = smov 16   ;;  %vm2733_vm5 = vmmov 0   ;;  %vm1995_vm6 = vcmask 1040384  }
  0x14   :  { %39 = vperm.xlu0 %2607, %v30_v4   ;;  %2380 = vmatpush3.msra.mxu0 %v61_v5  ;;  %v48_v21 = vld [vmem:[#allocation2] sm:$0xff]  ;;  %v47_v27 = vld [vmem:[#allocation2 + $0x90] sm:$0x3]  ;;  %v65_v35 = vld [vmem:[#allocation2 + $0x88] sm:$0xff]  ;;  %vm2162_vm7 = vcmask 41984   ;;  %s2734_s28 = smov [#allocation5]  }
  0x15   :  { %2381 = vmatprep.subr.mxu0 %v60_v9  ;;  %v148_v29 = vrot.slane %v47_v27, 7  ;;  %v144_v37 = vrot.slane %v47_v27, %v143_v33  ;;  %v64_v39 = vld [vmem:[#allocation2 + $0x80] sm:$0xff]  ;;  %v229_v61 = vld [vmem:[#allocation2 + $0xd0] sm:$0xff]  ;;  %v228_v62 = vld [vmem:[#allocation2 + $0xc8] sm:$0xff]  ;;  %s2181_s29 = sshll.u32 %s2734_s28, 4  ;;  %s2182_s29 = int_to_ptr.vmem [resolvable:$true] %s2181_s29 }
  0x16   :  { %2382 = vmatpush3.msra.mxu0 %v60_v9  ;;  %158 = vperm.xlu1 %2608, %v32_v8   ;;  %v227_v63 = vld [vmem:[#allocation2 + $0xc0] sm:$0xff]  ;;  %v226_v0 = vld [vmem:[#allocation2 + $0xb8] sm:$0xff]  ;;  %s2696_s30 = scalar_lea.vmem %s2182_s29, 32  ;;  %p2701_p6 = scmp.lt.s32.totalorder %s2182_s29, %s2182_s29 }
  0x17   :  { %2383 = vmatprep.subr.mxu0 %v59_v10  ;;  %v150_v31 = vsub.f32 %v47_v27, %v148_v29  ;;  %2410 = vmatprep.subr.mxu1 %v229_v61  ;;  %v2194_v8 = vld [vmem:[#allocation2 + $0x98] ss:$0 sm:$0xff]  ;;  %p2697_p5 = scmp.ne.s32.totalorder %s2182_s29, %s2696_s30  ;;  %p2702_p7 = scmp.lt.s32.totalorder %s2696_s30, %s2696_s30 }
  0x18   :  { %2609 = vset.pattern.permute.xlu0 %v2724_v7  ;;  %2384 = vmatpush3.msra.mxu0 %v59_v10  ;;  %v2195_v10 = vld [vmem:[#allocation2 + $0xa0] ss:$0 sm:$0xff] }
  0x19   :  { %2385 = vmatprep.subr.mxu0 %v58_v11  ;;  %v164_v34 = vrot.slane %v150_v31, %v163_v32  ;;  %2411 = vmatpush3.msra.mxu1 %v229_v61  ;;  %p2703_p8 = por %p2702_p7, %p2701_p6 }
  0x1a   :  { %2386 = vmatpush3.msra.mxu0 %v58_v11  ;;  %2412 = vmatprep.subr.mxu1 %v228_v62 }
  0x1b   :  { %2387 = vmatprep.subr.mxu0 %v57_v12  ;;  %2413 = vmatpush3.msra.mxu1 %v228_v62  ;;  %p2704_p9 = pnand %p2703_p8, %p2697_p5 }
  0x1c   :  { %2388 = vmatpush3.msra.mxu0 %v57_v12  ;;  %2414 = vmatprep.subr.mxu1 %v227_v63 }
  0x1d   :  { %2389 = vmatprep.subr.mxu0 %v56_v13  ;;  %2415 = vmatpush3.msra.mxu1 %v227_v63 }
  0x1e   :  { %2390 = vmatpush3.msra.mxu0 %v56_v13  ;;  %2416 = vmatprep.subr.mxu1 %v226_v0 }
  0x1f   :  { %2391 = vmatprep.subr.mxu0 %v55_v14  ;;  %2417 = vmatpush3.msra.mxu1 %v226_v0 }
  0x20   :  { %2392 = vmatpush3.msra.mxu0 %v55_v14 }
  0x21   :  { %2393 = vmatprep.subr.mxu0 %v54_v15 }
  0x22   :  { %2394 = vmatpush3.msra.mxu0 %v54_v15 }
  0x23   :  { %2395 = vmatprep.subr.mxu0 %v53_v16 }
  0x24   :  { %2396 = vmatpush3.msra.mxu0 %v53_v16 }
  0x25   :  { %2397 = vmatprep.subr.mxu0 %v52_v17 }
  0x26   :  { %2398 = vmatpush3.msra.mxu0 %v52_v17  ;;  %v2199_v17 = vld [vmem:[#allocation2 + $0xd8] ss:$0 sm:$0xff] }
  0x27   :  { %2399 = vmatprep.subr.mxu0 %v51_v18 }
  0x28   :  { %2400 = vmatpush3.msra.mxu0 %v51_v18 }
  0x29   :  { %2401 = vmatprep.subr.mxu0 %v50_v19 }
  0x2a   :  { %2402 = vmatpush3.msra.mxu0 %v50_v19 }
  0x2b   :  { %2403 = vmatprep.subr.mxu0 %v49_v20 }
  0x2c   :  { %2404 = vmatpush3.msra.mxu0 %v49_v20 }
  0x2d   :  { %2405 = vmatprep.subr.mxu0 %v48_v21 }
  0x2e   :  { %2406 = vmatpush3.msra.mxu0 %v48_v21 }
  0x8b   :  { %v37_v24 = vpop.permute.xlu0 %36 }
  0x8c   :  { %vm41_vm0 = vcmp.eq.s32.totalorder %v34_v23, %v37_v24  ;;  %v2196_v24 = vld [vmem:[%s2964_s1] ss:$0 sm:$0xff]  ;;  %s2727_s1 = smov 64  }
  0x8d   :  { %2407 = vmatprep.mubr.msk.f32.mxu0 %vm41_vm0, %v2725_v25  ;;  %v154_v30 = vpop.permute.xlu1 %153 }
  0x8e   :  { %v165_v43 = vmul.f32 %v164_v34, %v154_v30 }
  0x8f   :  { %v40_v26 = vpop.permute.xlu0 %39 }
  0x90   :  { %vm42_vm1 = vcmp.eq.s32.totalorder %v34_v23, %v40_v26  ;;  %v212_v26 = vld [vmem:[#allocation2 + $0xa8] sm:$0xff] }
  0x91   :  { %2408 = vmatmul.mubr.msk.f32.vlgmr.msra.gmra.mxu0 %vm42_vm1, %v2725_v25  ;;  %v159_v36 = vpop.permute.xlu1 %158  ;;  %v213_v25 = vld [vmem:[#allocation2 + $0xb0] sm:$0xff]  ;;  %v220_v28 = vmul.f32 %v2196_v24, %v212_v26 }
  0x92   :  { %v166_v41 = vmul.f32 %v164_v34, %v159_v36  ;;  %v221_v27 = vmul.f32 %v2196_v24, %v213_v25 }
  0x93   :  { %v2197_v30 = vadd.f32 -1.0, %v220_v28 }
  0x94   :  { %v2198_v29 = vadd.f32 -1.0, %v221_v27 }
  0x95   :  { %v2797_v34 = vmul.f32 1e+09, %v2197_v30  ;;  %v736_v30 = vld [vmem:[#allocation2 + $0xf8] sm:$0xff] }
  0x96   :  { %v2795_v31 = vmul.f32 1e+09, %v2198_v29  ;;  %2449 = vmatprep.subr.mxu0 %v736_v30 }
  0x97   :  { %2450 = vmatpush3.msra.mxu0 %v736_v30 }
 0x151   :  { %v2409_v38 = vpop.f32.mrf.mxu0 }
 0x152   :  { %v138_v40 = vadd.f32 %v2409_v38, %v65_v35 }
 0x153   :  { %v132_v42 = vpop.f32.mrf.mxu0 }
 0x154   :  { %v146_v44 = vadd.f32 %v144_v37, %v138_v40  ;;  %v133_v45 = vadd.f32 %v132_v42, %v64_v39 }
 0x156   :  { %v145_v46 = vadd.f32 %v144_v37, %v133_v45  ;;  %v168_v47 = vadd.f32 %v166_v41, %v146_v44 }
 0x158   :  { %v175_v48 = vsel %vm171_vm2, %v168_v47, 0.0  ;;  %v167_v49 = vadd.f32 %v165_v43, %v145_v46 }
 0x159   :  { %176 = vadd.xlane.f32.xlu1 %v175_v48 }
 0x15a   :  { %v172_v50 = vsel %vm171_vm2, %v167_v49, 0.0 }
 0x15b   :  { %173 = vadd.xlane.f32.xlu0 %v172_v50 }
 0x1e2   :  { %v177_v51 = vpop.xlane.xlu1 %176 }
 0x1e3   :  { %v180_v52 = vmul.f32 0.03125, %v177_v51 }
 0x1e4   :  { %v174_v53 = vpop.xlane.xlu0 %173 }
 0x1e5   :  { %v179_v54 = vmul.f32 0.03125, %v174_v53  ;;  %v182_v55 = vsub.f32 %v168_v47, %v180_v52 }
 0x1e7   :  { %v181_v56 = vsub.f32 %v167_v49, %v179_v54  ;;  %v184_v59 = vmul.f32 %v182_v55, %v182_v55 }
 0x1e9   :  { %v183_v57 = vmul.f32 %v181_v56, %v181_v56  ;;  %v188_v60 = vsel %vm171_vm2, %v184_v59, 0.0 }
 0x1eb   :  { %v185_v58 = vsel %vm171_vm2, %v183_v57, 0.0 }
 0x1ec   :  { %186 = vadd.xlane.f32.xlu0 %v185_v58 }
 0x1f0   :  { %189 = vadd.xlane.f32.xlu0 %v188_v60 }
 0x275   :  { %v187_v1 = vpop.xlane.xlu0 %186 }
 0x276   :  { %v191_v2 = vmul.f32 0.03125, %v187_v1 }
 0x278   :  { %v193_v3 = vadd.f32 1e-12, %v191_v2 }
 0x279   :  { %v190_v4 = vpop.xlane.xlu0 %189 }
 0x27a   :  { %2610 = vrsqrt.f32 %v193_v3  ;;  %v192_v5 = vmul.f32 0.03125, %v190_v4 }
 0x27c   :  { %v194_v6 = vadd.f32 1e-12, %v192_v5 }
 0x27e   :  { %2612 = vrsqrt.f32 %v194_v6 }
 0x287   :  { %v2611_v7 = vpop.eup %2610 }
 0x288   :  { %v197_v9 = vmul.f32 %v2611_v7, %v181_v56 }
 0x28a   :  { %v203_v11 = vmul.f32 %v2194_v8, %v197_v9 }
 0x28b   :  { %v2613_v12 = vpop.eup %2612 }
 0x28c   :  { %v198_v13 = vmul.f32 %v2613_v12, %v182_v55  ;;  %v2768_v14 = vadd.f32 %v2195_v10, %v203_v11 }
 0x28e   :  { %v204_v15 = vmul.f32 %v2194_v8, %v198_v13  ;;  %2418 = vmatprep.mubr.msk.f32.mxu1 %vm171_vm2, %v2768_v14 }
 0x290   :  { %v2772_v16 = vadd.f32 %v2195_v10, %v204_v15 }
 0x292   :  { %2419 = vmatmul.mubr.msk.f32.vlgmr.msra.gmra.mxu1 %vm171_vm2, %v2772_v16 }
 0x352   :  { %v2420_v18 = vpop.f32.mrf.mxu1 }
 0x353   :  { %v2776_v19 = vadd.f32 %v2420_v18, %v2199_v17 }
 0x354   :  { %v307_v20 = vpop.f32.mrf.mxu1 }
 0x355   :  { %v2778_v21 = vadd.f32 %v2199_v17, %v307_v20  ;;  %320 = vrot.lane.b32.xlu1 %v2776_v19, %s2726_s0 }
 0x357   :  { %318 = vrot.lane.b32.xlu0 %v2778_v21, %s2726_s0  ;;  %2425 = vmatprep.mubr.msk.f32.mxu1 %vm322_vm3, %v2778_v21 }
 0x3c7   :  { %v321_v22 = vpop.permute.xlu1 %320 }
 0x3c8   :  { %2421 = vmatprep.subr.msk.mxu1 %vm322_vm3, %v321_v22 }
 0x3c9   :  { %2422 = vmatpush3.xpose.msk.msra.mxu1 %vm322_vm3, %v321_v22  ;;  %v319_v23 = vpop.permute.xlu0 %318 }
 0x3ca   :  { %2423 = vmatprep.subr.msk.mxu1 %vm322_vm3, %v319_v23 }
 0x3cd   :  { %2424 = vmatpush3.xpose.msk.msra.mxu1 %vm322_vm3, %v319_v23 }
 0x3d0   :  { %2426 = vmatmul.mubr.msk.f32.vlgmr.msra.gmra.mxu1 %vm322_vm3, %v2776_v19 }
 0x490   :  { %v2427_v32 = vpop.f32.mrf.mxu1 }
 0x491   :  { %v407_v33 = vmul.f32 0.25, %v2427_v32  ;;  %v735_v32 = vld [vmem:[#allocation2 + $0xf0] sm:$0xff] }
 0x492   :  { %v397_v35 = vpop.f32.mrf.mxu1  ;;  %2451 = vmatprep.subr.mxu0 %v735_v32 }
 0x493   :  { %v406_v36 = vmul.f32 0.25, %v397_v35  ;;  %v409_v37 = vadd.f32 %v407_v33, %v2795_v31  ;;  %2452 = vmatpush3.msra.mxu0 %v735_v32  ;;  %v733_v33 = vld [vmem:[#allocation2 + $0xe0] sm:$0xff] }
 0x495   :  { %v413_v38 = vsel %vm322_vm3, %v409_v37, -inf  ;;  %v408_v39 = vadd.f32 %v406_v36, %v2797_v34 }
 0x496   :  { %414 = vmax.xlane.f32.xlu0 %v413_v38 }
 0x497   :  { %v410_v40 = vsel %vm322_vm3, %v408_v39, -inf }
 0x498   :  { %411 = vmax.xlane.f32.xlu1 %v410_v40 }
 0x4a9   :  { %434 = vrot.lane.b32.xlu1 %v2776_v19, %s2727_s1 }
 0x4ad   :  { %525 = vrot.lane.b32.xlu1 %v2776_v19, %s2728_s24 }
 0x4b1   :  { %523 = vrot.lane.b32.xlu1 %v2778_v21, %s2728_s24 }
 0x51f   :  { %v415_v41 = vpop.xlane.xlu0 %414 }
 0x520   :  { %v417_v42 = vsub.f32 %v409_v37, %v415_v41  ;;  %v2214_v41 = vld [vmem:[#allocation2 + $0x100] ss:$0 sm:$0xff] }
 0x521   :  { %v412_v43 = vpop.xlane.xlu1 %411 }
 0x522   :  { %v420_v44 = vmul.f32 1.442695, %v417_v42  ;;  %v416_v45 = vsub.f32 %v408_v39, %v412_v43 }
 0x524   :  { %2614 = vpow2.f32 %v420_v44  ;;  %v418_v46 = vmul.f32 1.442695, %v416_v45 }
 0x525   :  { %v435_v47 = vpop.permute.xlu1 %434 }
 0x526   :  { %2616 = vpow2.f32 %v418_v46  ;;  %2428 = vmatprep.subr.mxu1 %v435_v47 }
 0x527   :  { %2429 = vmatpush3.msra.mxu1 %v435_v47 }
 0x529   :  { %v526_v52 = vpop.permute.xlu1 %525 }
 0x52d   :  { %v524_v53 = vpop.permute.xlu1 %523 }
 0x531   :  { %v2615_v48 = vpop.eup %2614 }
 0x532   :  { %v425_v49 = vsel %vm322_vm3, %v2615_v48, 0.0 }
 0x533   :  { %v2617_v50 = vpop.eup %2616  ;;  %426 = vadd.xlane.f32.xlu0 %v425_v49 }
 0x534   :  { %v422_v51 = vsel %vm322_vm3, %v2617_v50, 0.0 }
 0x535   :  { %423 = vadd.xlane.f32.xlu1 %v422_v51 }
 0x546   :  { %521 = vrot.lane.b32.xlu1 %v2776_v19, %s2729_s25 }
 0x549   :  { %432 = vrot.lane.b32.xlu0 %v2778_v21, %s2727_s1 }
 0x54d   :  { %519 = vrot.lane.b32.xlu0 %v2778_v21, %s2729_s25 }
 0x5bc   :  { %v427_v54 = vpop.xlane.xlu0 %426 }
 0x5bd   :  { %2618 = vrcp.f32 %v427_v54 }
 0x5be   :  { %v424_v55 = vpop.xlane.xlu1 %423 }
 0x5bf   :  { %2620 = vrcp.f32 %v424_v55 }
 0x5c0   :  { %v433_v56 = vpop.permute.xlu0 %432 }
 0x5c1   :  { %2430 = vmatprep.subr.mxu1 %v433_v56 }
 0x5c2   :  { %2431 = vmatpush3.msra.mxu1 %v433_v56  ;;  %v522_v62 = vpop.permute.xlu1 %521 }
 0x5c3   :  { %2435 = vmatprep.subr.msk.mxu1 %vm322_vm3, %v526_v52 }
 0x5c4   :  { %v520_v61 = vpop.permute.xlu0 %519 }
 0x5ca   :  { %v2619_v57 = vpop.eup %2618 }
 0x5cb   :  { %v431_v60 = vmul.f32 %v2619_v57, %v2615_v48 }
 0x5cc   :  { %v2621_v58 = vpop.eup %2620 }
 0x5cd   :  { %v430_v59 = vmul.f32 %v2621_v58, %v2617_v50 }
 0x5cf   :  { %2432 = vmatprep.mubr.msk.f32.mxu1 %vm322_vm3, %v430_v59  ;;  %v868_v59 = vld [vmem:[#allocation2 + $0x130] sm:$0xff] }
 0x5d0   :  { %2433 = vmatmul.mubr.msk.f32.vlgmr.msra.gmra.mxu1 %vm322_vm3, %v431_v60  ;;  %v866_v60 = vld [vmem:[#allocation2 + $0x120] sm:$0xff] }
 0x5d1   :  { %2436 = vmatpush3.xpose.msk.msra.mxu1 %vm322_vm3, %v526_v52  ;;  %2439 = vmatprep.mubr.msk.f32.mxu1 %vm322_vm3, %v520_v61  ;;  %v865_v61 = vld [vmem:[#allocation2 + $0x118] sm:$0xff] }
 0x5d2   :  { %2437 = vmatprep.subr.msk.mxu1 %vm322_vm3, %v524_v53 }
 0x5d5   :  { %2438 = vmatpush3.xpose.msk.msra.mxu1 %vm322_vm3, %v524_v53 }
 0x5d8   :  { %2440 = vmatmul.mubr.msk.f32.vlgmr.msra.gmra.mxu1 %vm322_vm3, %v522_v62 }
 0x690   :  { %v2825_v63 = vpop.f32.mrf.mxu1 }
 0x692   :  { %v2827_v0 = vpop.f32.mrf.mxu1 }
 0x698   :  { %v2441_v1 = vpop.f32.mrf.mxu1 }
 0x699   :  { %v611_v2 = vmul.f32 0.25, %v2441_v1 }
 0x69a   :  { %v601_v3 = vpop.f32.mrf.mxu1 }
 0x69b   :  { %v610_v4 = vmul.f32 0.25, %v601_v3  ;;  %v613_v5 = vadd.f32 %v611_v2, %v2795_v31 }
 0x69d   :  { %v617_v6 = vsel %vm322_vm3, %v613_v5, -inf  ;;  %v612_v7 = vadd.f32 %v610_v4, %v2797_v34 }
 0x69e   :  { %618 = vmax.xlane.f32.xlu1 %v617_v6 }
 0x69f   :  { %v614_v8 = vsel %vm322_vm3, %v612_v7, -inf }
 0x6a0   :  { %615 = vmax.xlane.f32.xlu0 %v614_v8 }
 0x6af   :  { %638 = vrot.lane.b32.xlu1 %v2776_v19, %s2730_s26 }
 0x727   :  { %v619_v9 = vpop.xlane.xlu1 %618 }
 0x728   :  { %v621_v10 = vsub.f32 %v613_v5, %v619_v9  ;;  %v2217_v5 = vld [vmem:[#allocation2 + $0x108] ss:$0 sm:$0xff] }
 0x729   :  { %v616_v11 = vpop.xlane.xlu0 %615 }
 0x72a   :  { %v624_v12 = vmul.f32 1.442695, %v621_v10  ;;  %v620_v13 = vsub.f32 %v612_v7, %v616_v11  ;;  %v2218_v7 = vld [vmem:[#allocation2 + $0x110] ss:$0 sm:$0xff] }
 0x72b   :  { %v639_v15 = vpop.permute.xlu1 %638 }
 0x72c   :  { %2622 = vpow2.f32 %v624_v12  ;;  %v622_v17 = vmul.f32 1.442695, %v620_v13  ;;  %2442 = vmatprep.subr.mxu1 %v639_v15 }
 0x72d   :  { %2443 = vmatpush3.msra.mxu1 %v639_v15  ;;  %v980_v15 = vld [vmem:[#allocation2 + $0x178] sm:$0xff] }
 0x72e   :  { %2624 = vpow2.f32 %v622_v17  ;;  %v979_v17 = vld [vmem:[#allocation2 + $0x170] sm:$0xff] }
 0x739   :  { %v2623_v18 = vpop.eup %2622 }
 0x73a   :  { %v629_v20 = vsel %vm322_vm3, %v2623_v18, 0.0 }
 0x73b   :  { %v2625_v22 = vpop.eup %2624  ;;  %630 = vadd.xlane.f32.xlu0 %v629_v20  ;;  %v977_v20 = vld [vmem:[#allocation2 + $0x160] sm:$0xff] }
 0x73c   :  { %v626_v23 = vsel %vm322_vm3, %v2625_v22, 0.0 }
 0x73f   :  { %627 = vadd.xlane.f32.xlu0 %v626_v23  ;;  %v975_v23 = vld [vmem:[#allocation2 + $0x150] sm:$0xff] }
 0x755   :  { %636 = vrot.lane.b32.xlu0 %v2778_v21, %s2730_s26  ;;  %v734_v21 = vld [vmem:[#allocation2 + $0xe8] sm:$0xff] }
 0x756   :  { %2453 = vmatprep.subr.mxu0 %v734_v21 }
 0x757   :  { %2454 = vmatpush3.msra.mxu0 %v734_v21 }
 0x758   :  { %2455 = vmatprep.subr.mxu0 %v733_v33 }
 0x759   :  { %2456 = vmatpush3.msra.mxu0 %v733_v33 }
 0x75a   :  { %2471 = vmatprep.subr.mxu0 %v980_v15 }
 0x7c4   :  { %v631_v19 = vpop.xlane.xlu0 %630 }
 0x7c5   :  { %2626 = vrcp.f32 %v631_v19  ;;  %v974_v19 = vld [vmem:[#allocation2 + $0x148] sm:$0xff] }
 0x7c8   :  { %v628_v24 = vpop.xlane.xlu0 %627 }
 0x7c9   :  { %2628 = vrcp.f32 %v628_v24  ;;  %v973_v24 = vld [vmem:[#allocation2 + $0x140] sm:$0xff] }
 0x7cc   :  { %v637_v25 = vpop.permute.xlu0 %636 }
 0x7cd   :  { %2444 = vmatprep.subr.mxu1 %v637_v25 }
 0x7ce   :  { %2445 = vmatpush3.msra.mxu1 %v637_v25  ;;  %v2219_v25 = vld [vmem:[#allocation2 + $0x138] ss:$0 sm:$0xff] }
 0x7cf   :  { %2460 = vmatprep.subr.mxu1 %v868_v59 }
 0x7d2   :  { %v2627_v26 = vpop.eup %2626 }
 0x7d3   :  { %v635_v29 = vmul.f32 %v2627_v26, %v2623_v18  ;;  %v978_v18 = vld [vmem:[#allocation2 + $0x168] sm:$0xff] }
 0x7d6   :  { %v2629_v27 = vpop.eup %2628 }
 0x7d7   :  { %v634_v28 = vmul.f32 %v2629_v27, %v2625_v22  ;;  %v976_v22 = vld [vmem:[#allocation2 + $0x158] sm:$0xff] }
 0x7d9   :  { %2446 = vmatprep.mubr.msk.f32.mxu1 %vm322_vm3, %v634_v28 }
 0x7da   :  { %2447 = vmatmul.mubr.msk.f32.vlgmr.msra.gmra.mxu1 %vm322_vm3, %v635_v29 }
 0x7db   :  { %2461 = vmatpush3.msra.mxu1 %v868_v59 }
 0x89a   :  { %v2448_v35 = vpop.f32.mrf.mxu1 }
 0x89c   :  { %v714_v36 = vpop.f32.mrf.mxu1 }
 0x89d   :  { %725 = vrot.lane.b32.xlu1 %v714_v36, %s2731_s27 }
 0x8a1   :  { %727 = vrot.lane.b32.xlu1 %v2448_v35, %s2731_s27 }
 0x90f   :  { %v726_v37 = vpop.permute.xlu1 %725 }
 0x910   :  { %v731_v38 = vsel %vm322_vm3, %v2827_v0, %v726_v37 }
 0x911   :  { %2457 = vmatprep.mubr.msk.f32.mxu0 %vm171_vm2, %v731_v38 }
 0x913   :  { %v728_v39 = vpop.permute.xlu1 %727 }
 0x914   :  { %v732_v40 = vsel %vm322_vm3, %v2825_v63, %v728_v39 }
 0x915   :  { %2458 = vmatmul.mubr.msk.f32.vlgmr.msra.gmra.mxu0 %vm171_vm2, %v732_v40 }
 0x916   :  { %2472 = vmatpush3.msra.mxu0 %v980_v15 }
 0x917   :  { %2473 = vmatprep.subr.mxu0 %v979_v17 }
 0x918   :  { %2474 = vmatpush3.msra.mxu0 %v979_v17 }
 0x919   :  { %2475 = vmatprep.subr.mxu0 %v978_v18 }
 0x91a   :  { %2476 = vmatpush3.msra.mxu0 %v978_v18 }
 0x91b   :  { %2477 = vmatprep.subr.mxu0 %v977_v20 }
 0x91c   :  { %2478 = vmatpush3.msra.mxu0 %v977_v20 }
 0x91d   :  { %2479 = vmatprep.subr.mxu0 %v976_v22 }
 0x91e   :  { %2480 = vmatpush3.msra.mxu0 %v976_v22  ;;  %v2226_v22 = vld [vmem:[#allocation2 + $0x190] ss:$0 sm:$0xff] }
 0x91f   :  { %2481 = vmatprep.subr.mxu0 %v975_v23 }
 0x920   :  { %2482 = vmatpush3.msra.mxu0 %v975_v23 }
 0x921   :  { %2483 = vmatprep.subr.mxu0 %v974_v19 }
 0x922   :  { %2484 = vmatpush3.msra.mxu0 %v974_v19 }
 0x923   :  { %2485 = vmatprep.subr.mxu0 %v973_v24 }
 0x924   :  { %2486 = vmatpush3.msra.mxu0 %v973_v24 }
 0x9d5   :  { %v2459_v42 = vpop.f32.mrf.mxu0 }
 0x9d6   :  { %v820_v43 = vadd.f32 %v2459_v42, %v2214_v41 }
 0x9d7   :  { %v814_v44 = vpop.f32.mrf.mxu0 }
 0x9d8   :  { %v815_v45 = vadd.f32 %v2214_v41, %v814_v44  ;;  %v824_v46 = vadd.f32 %v820_v43, %v2772_v16 }
 0x9da   :  { %v830_v47 = vsel %vm171_vm2, %v824_v46, 0.0  ;;  %v823_v48 = vadd.f32 %v815_v45, %v2768_v14  ;;  %v867_v14 = vld [vmem:[#allocation2 + $0x128] sm:$0xff] }
 0x9db   :  { %831 = vadd.xlane.f32.xlu1 %v830_v47  ;;  %2462 = vmatprep.subr.mxu1 %v867_v14 }
 0x9dc   :  { %v827_v49 = vsel %vm171_vm2, %v823_v48, 0.0  ;;  %2463 = vmatpush3.msra.mxu1 %v867_v14 }
 0x9dd   :  { %828 = vadd.xlane.f32.xlu0 %v827_v49  ;;  %2464 = vmatprep.subr.mxu1 %v866_v60  ;;  %v2222_v49 = vld [vmem:[#allocation2 + $0x180] ss:$0 sm:$0xff] }
 0x9de   :  { %2465 = vmatpush3.msra.mxu1 %v866_v60 }
 0x9df   :  { %2466 = vmatprep.subr.mxu1 %v865_v61 }
 0x9e0   :  { %2467 = vmatpush3.msra.mxu1 %v865_v61 }
 0xa64   :  { %v832_v50 = vpop.xlane.xlu1 %831 }
 0xa65   :  { %v834_v51 = vmul.f32 0.03125, %v832_v50 }
 0xa66   :  { %v829_v52 = vpop.xlane.xlu0 %828 }
 0xa67   :  { %v833_v53 = vmul.f32 0.03125, %v829_v52  ;;  %v836_v54 = vsub.f32 %v824_v46, %v834_v51 }
 0xa69   :  { %v835_v55 = vsub.f32 %v823_v48, %v833_v53  ;;  %v838_v58 = vmul.f32 %v836_v54, %v836_v54 }
 0xa6b   :  { %v837_v56 = vmul.f32 %v835_v55, %v835_v55  ;;  %v842_v16 = vsel %vm171_vm2, %v838_v58, 0.0 }
 0xa6d   :  { %v839_v57 = vsel %vm171_vm2, %v837_v56, 0.0 }
 0xa6e   :  { %840 = vadd.xlane.f32.xlu0 %v839_v57 }
 0xa72   :  { %843 = vadd.xlane.f32.xlu0 %v842_v16 }
 0xaf7   :  { %v841_v62 = vpop.xlane.xlu0 %840 }
 0xaf8   :  { %v845_v63 = vmul.f32 0.03125, %v841_v62 }
 0xafa   :  { %v847_v0 = vadd.f32 1e-12, %v845_v63 }
 0xafb   :  { %v844_v1 = vpop.xlane.xlu0 %843 }
 0xafc   :  { %2630 = vrsqrt.f32 %v847_v0  ;;  %v846_v2 = vmul.f32 0.03125, %v844_v1 }
 0xafe   :  { %v848_v3 = vadd.f32 1e-12, %v846_v2  ;;  %v1113_v2 = vld [vmem:[#allocation2 + $0x1b0] sm:$0xff] }
 0xaff   :  { %2490 = vmatprep.subr.mxu1 %v1113_v2 }
 0xb00   :  { %2632 = vrsqrt.f32 %v848_v3  ;;  %v1112_v3 = vld [vmem:[#allocation2 + $0x1a8] sm:$0xff] }
 0xb09   :  { %v2631_v4 = vpop.eup %2630 }
 0xb0a   :  { %v851_v6 = vmul.f32 %v2631_v4, %v835_v55  ;;  %v1111_v4 = vld [vmem:[#allocation2 + $0x1a0] sm:$0xff] }
 0xb0c   :  { %v857_v8 = vmul.f32 %v2217_v5, %v851_v6 }
 0xb0d   :  { %v2633_v9 = vpop.eup %2632 }
 0xb0e   :  { %v852_v10 = vmul.f32 %v2633_v9, %v836_v54  ;;  %v2855_v11 = vadd.f32 %v2218_v7, %v857_v8 }
 0xb10   :  { %v858_v12 = vmul.f32 %v2217_v5, %v852_v10  ;;  %2468 = vmatprep.mubr.msk.f32.mxu1 %vm171_vm2, %v2855_v11  ;;  %v1110_v5 = vld [vmem:[#allocation2 + $0x198] sm:$0xff] }
 0xb12   :  { %v864_v13 = vadd.f32 %v2218_v7, %v858_v12 }
 0xb14   :  { %2469 = vmatmul.mubr.msk.f32.vlgmr.msra.gmra.mxu1 %vm171_vm2, %v864_v13 }
 0xb15   :  { %2491 = vmatpush3.msra.mxu1 %v1113_v2 }
 0xb16   :  { %2492 = vmatprep.subr.mxu1 %v1112_v3 }
 0xb17   :  { %2493 = vmatpush3.msra.mxu1 %v1112_v3 }
 0xb18   :  { %2494 = vmatprep.subr.mxu1 %v1111_v4 }
 0xb19   :  { %2495 = vmatpush3.msra.mxu1 %v1111_v4 }
 0xb1a   :  { %2496 = vmatprep.subr.mxu1 %v1110_v5 }
 0xb1b   :  { %2497 = vmatpush3.msra.mxu1 %v1110_v5 }
 0xbd4   :  { %v2470_v26 = vpop.f32.mrf.mxu1 }
 0xbd5   :  { %v952_v27 = vadd.f32 %v2470_v26, %v2219_v25 }
 0xbd6   :  { %v946_v28 = vpop.f32.mrf.mxu1 }
 0xbd7   :  { %v956_v29 = vmul.f32 %v952_v27, %v952_v27  ;;  %v947_v30 = vadd.f32 %v2219_v25, %v946_v28  ;;  %v2227_v25 = vld [vmem:[#allocation2 + $0x1b8] ss:$0 sm:$0xff] }
 0xbd9   :  { %v958_v32 = vmul.f32 %v956_v29, %v952_v27  ;;  %v955_v21 = vmul.f32 %v947_v30, %v947_v30 }
 0xbdb   :  { %v960_v33 = vmul.f32 0.044715, %v958_v32  ;;  %v957_v35 = vmul.f32 %v955_v21, %v947_v30 }
 0xbdd   :  { %v962_v36 = vadd.f32 %v960_v33, %v952_v27  ;;  %v959_v37 = vmul.f32 0.044715, %v957_v35 }
 0xbdf   :  { %v964_v38 = vmul.f32 0.7978846, %v962_v36  ;;  %v961_v39 = vadd.f32 %v959_v37, %v947_v30 }
 0xbe1   :  { %2634 = vtanh.f32 %v964_v38  ;;  %v963_v40 = vmul.f32 0.7978846, %v961_v39 }
 0xbe3   :  { %2636 = vtanh.f32 %v963_v40 }
 0xbee   :  { %v2635_v41 = vpop.eup %2634 }
 0xbef   :  { %v968_v42 = vadd.f32 1.0, %v2635_v41 }
 0xbf0   :  { %v2637_v43 = vpop.eup %2636 }
 0xbf1   :  { %v967_v44 = vadd.f32 1.0, %v2637_v43  ;;  %v970_v45 = vmul.f32 0.5, %v968_v42 }
 0xbf3   :  { %v969_v46 = vmul.f32 0.5, %v967_v44  ;;  %v972_v48 = vmul.f32 %v970_v45, %v952_v27 }
 0xbf5   :  { %v971_v47 = vmul.f32 %v969_v46, %v947_v30 }
 0xbf7   :  { %2487 = vmatprep.mubr.msk.f32.mxu0 %vm986_vm4, %v971_v47 }
 0xbf8   :  { %2488 = vmatmul.mubr.msk.f32.vlgmr.msra.gmra.mxu0 %vm986_vm4, %v972_v48 }
 0xcb8   :  { %v2489_v50 = vpop.f32.mrf.mxu0 }
 0xcb9   :  { %v1065_v51 = vadd.f32 %v2489_v50, %v2222_v49 }
 0xcba   :  { %v1059_v52 = vpop.f32.mrf.mxu0 }
 0xcbb   :  { %v1060_v53 = vadd.f32 %v2222_v49, %v1059_v52  ;;  %v1069_v54 = vadd.f32 %v1065_v51, %v864_v13  ;;  %v2225_v13 = vld [vmem:[#allocation2 + $0x188] ss:$0 sm:$0xff] }
 0xcbd   :  { %v1075_v55 = vsel %vm171_vm2, %v1069_v54, 0.0  ;;  %v1068_v56 = vadd.f32 %v1060_v53, %v2855_v11 }
 0xcbe   :  { %1076 = vadd.xlane.f32.xlu0 %v1075_v55 }
 0xcbf   :  { %v1072_v57 = vsel %vm171_vm2, %v1068_v56, 0.0 }
 0xcc0   :  { %1073 = vadd.xlane.f32.xlu1 %v1072_v57 }
 0xd47   :  { %v1077_v58 = vpop.xlane.xlu0 %1076 }
 0xd48   :  { %v1079_v16 = vmul.f32 0.03125, %v1077_v58 }
 0xd49   :  { %v1074_v59 = vpop.xlane.xlu1 %1073 }
 0xd4a   :  { %v1081_v14 = vsub.f32 %v1069_v54, %v1079_v16  ;;  %v1078_v60 = vmul.f32 0.03125, %v1074_v59 }
 0xd4c   :  { %v1080_v61 = vsub.f32 %v1068_v56, %v1078_v60  ;;  %v1083_v62 = vmul.f32 %v1081_v14, %v1081_v14 }
 0xd4e   :  { %v1087_v63 = vsel %vm171_vm2, %v1083_v62, 0.0  ;;  %v1082_v0 = vmul.f32 %v1080_v61, %v1080_v61 }
 0xd4f   :  { %1088 = vadd.xlane.f32.xlu0 %v1087_v63 }
 0xd50   :  { %v1084_v1 = vsel %vm171_vm2, %v1082_v0, 0.0 }
 0xd51   :  { %1085 = vadd.xlane.f32.xlu1 %v1084_v1 }
 0xdd8   :  { %v1089_v6 = vpop.xlane.xlu0 %1088 }
 0xdd9   :  { %v1091_v7 = vmul.f32 0.03125, %v1089_v6 }
 0xdda   :  { %v1086_v8 = vpop.xlane.xlu1 %1085 }
 0xddb   :  { %v1093_v9 = vadd.f32 1e-12, %v1091_v7  ;;  %v1090_v10 = vmul.f32 0.03125, %v1086_v8 }
 0xddd   :  { %2638 = vrsqrt.f32 %v1093_v9  ;;  %v1092_v11 = vadd.f32 1e-12, %v1090_v10 }
 0xddf   :  { %2640 = vrsqrt.f32 %v1092_v11 }
 0xdea   :  { %v2639_v12 = vpop.eup %2638 }
 0xdeb   :  { %v1097_v15 = vmul.f32 %v2639_v12, %v1081_v14 }
 0xdec   :  { %v2641_v17 = vpop.eup %2640 }
 0xded   :  { %v1096_v18 = vmul.f32 %v2641_v17, %v1080_v61  ;;  %v1103_v20 = vmul.f32 %v2225_v13, %v1097_v15 }
 0xdef   :  { %v1102_v23 = vmul.f32 %v2225_v13, %v1096_v18  ;;  %v2869_v24 = vadd.f32 %v2226_v22, %v1103_v20 }
 0xdf1   :  { %v2867_v19 = vadd.f32 %v2226_v22, %v1102_v23 }
 0xdf3   :  { %2498 = vmatprep.mubr.msk.f32.mxu1 %vm171_vm2, %v2867_v19 }
 0xdf4   :  { %2499 = vmatmul.mubr.msk.f32.vlgmr.msra.gmra.mxu1 %vm171_vm2, %v2869_v24 }
 0xeb4   :  { %v2500_v26 = vpop.f32.mrf.mxu1 }
 0xeb5   :  { %v2875_v27 = vadd.f32 %v2500_v26, %v2227_v25  ;;  %v1619_v26 = vld [vmem:[#allocation2 + $0x1d8] sm:$0xff] }
 0xeb6   :  { %v1191_v28 = vpop.f32.mrf.mxu1 }
 0xeb7   :  { %v2877_v29 = vadd.f32 %v2227_v25, %v1191_v28  ;;  %1204 = vrot.lane.b32.xlu1 %v2875_v27, %s2726_s0  ;;  %v1617_v28 = vld [vmem:[#allocation2 + $0x1c8] sm:$0xff] }
 0xeb9   :  { %1202 = vrot.lane.b32.xlu0 %v2877_v29, %s2726_s0  ;;  %2505 = vmatprep.mubr.msk.f32.mxu1 %vm322_vm3, %v2877_v29 }
 0xebb   :  { %1408 = vrot.lane.b32.xlu1 %v2875_v27, %s2728_s24 }
 0xebd   :  { %1402 = vrot.lane.b32.xlu0 %v2877_v29, %s2729_s25 }
 0xebf   :  { %1406 = vrot.lane.b32.xlu1 %v2877_v29, %s2728_s24 }
 0xec3   :  { %1404 = vrot.lane.b32.xlu1 %v2875_v27, %s2729_s25 }
 0xf29   :  { %v1205_v30 = vpop.permute.xlu1 %1204 }
 0xf2a   :  { %2501 = vmatprep.subr.msk.mxu1 %vm322_vm3, %v1205_v30 }
 0xf2b   :  { %2502 = vmatpush3.xpose.msk.msra.mxu1 %vm322_vm3, %v1205_v30  ;;  %v1203_v32 = vpop.permute.xlu0 %1202 }
 0xf2c   :  { %2503 = vmatprep.subr.msk.mxu1 %vm322_vm3, %v1203_v32 }
 0xf2d   :  { %v1409_v21 = vpop.permute.xlu1 %1408 }
 0xf2f   :  { %2504 = vmatpush3.xpose.msk.msra.mxu1 %vm322_vm3, %v1203_v32  ;;  %v1403_v33 = vpop.permute.xlu0 %1402 }
 0xf30   :  { %2515 = vmatprep.subr.msk.mxu1 %vm322_vm3, %v1409_v21 }
 0xf31   :  { %v1407_v35 = vpop.permute.xlu1 %1406 }
 0xf32   :  { %2506 = vmatmul.mubr.msk.f32.vlgmr.msra.gmra.mxu1 %vm322_vm3, %v2875_v27 }
 0xf33   :  { %2516 = vmatpush3.xpose.msk.msra.mxu1 %vm322_vm3, %v1409_v21  ;;  %2519 = vmatprep.mubr.msk.f32.mxu1 %vm322_vm3, %v1403_v33 }
 0xf34   :  { %2517 = vmatprep.subr.msk.mxu1 %vm322_vm3, %v1407_v35 }
 0xf35   :  { %v1405_v36 = vpop.permute.xlu1 %1404 }
 0xf37   :  { %2518 = vmatpush3.xpose.msk.msra.mxu1 %vm322_vm3, %v1407_v35 }
 0xf3a   :  { %2520 = vmatmul.mubr.msk.f32.vlgmr.msra.gmra.mxu1 %vm322_vm3, %v1405_v36 }
 0xff2   :  { %v2507_v37 = vpop.f32.mrf.mxu1 }
 0xff3   :  { %v1290_v38 = vmul.f32 0.25, %v2507_v37 }
 0xff4   :  { %v1280_v39 = vpop.f32.mrf.mxu1 }
 0xff5   :  { %v1289_v40 = vmul.f32 0.25, %v1280_v39  ;;  %v1292_v41 = vadd.f32 %v1290_v38, %v2795_v31  ;;  %v2242_v39 = vld [vmem:[#allocation2 + $0x1e0] ss:$0 sm:$0xff] }
 0xff7   :  { %v1296_v42 = vsel %vm322_vm3, %v1292_v41, -inf  ;;  %v1291_v43 = vadd.f32 %v1289_v40, %v2797_v34 }
 0xff8   :  { %1297 = vmax.xlane.f32.xlu1 %v1296_v42 }
 0xff9   :  { %v1293_v44 = vsel %vm322_vm3, %v1291_v43, -inf }
 0xffa   :  { %v2521_v45 = vpop.f32.mrf.mxu1  ;;  %1294 = vmax.xlane.f32.xlu0 %v1293_v44 }
 0xffb   :  { %v1494_v47 = vmul.f32 0.25, %v2521_v45 }
 0xffc   :  { %v1484_v46 = vpop.f32.mrf.mxu1 }
 0xffd   :  { %v1493_v48 = vmul.f32 0.25, %v1484_v46  ;;  %v1496_v51 = vadd.f32 %v1494_v47, %v2795_v31 }
 0xfff   :  { %v1495_v49 = vadd.f32 %v1493_v48, %v2797_v34  ;;  %v1500_v52 = vsel %vm322_vm3, %v1496_v51, -inf }
0x1001   :  { %v1497_v50 = vsel %vm322_vm3, %v1495_v49, -inf }
0x1002   :  { %1498 = vmax.xlane.f32.xlu0 %v1497_v50 }
0x1006   :  { %1501 = vmax.xlane.f32.xlu0 %v1500_v52 }
0x1009   :  { %1317 = vrot.lane.b32.xlu1 %v2875_v27, %s2727_s1 }
0x1081   :  { %v1298_v53 = vpop.xlane.xlu1 %1297 }
0x1082   :  { %v1300_v54 = vsub.f32 %v1292_v41, %v1298_v53 }
0x1083   :  { %v1295_v55 = vpop.xlane.xlu0 %1294 }
0x1084   :  { %v1303_v56 = vmul.f32 1.442695, %v1300_v54  ;;  %v1299_v57 = vsub.f32 %v1291_v43, %v1295_v55 }
0x1085   :  { %v1318_v58 = vpop.permute.xlu1 %1317 }
0x1086   :  { %2642 = vpow2.f32 %v1303_v56  ;;  %v1301_v16 = vmul.f32 1.442695, %v1299_v57  ;;  %2508 = vmatprep.subr.mxu0 %v1318_v58  ;;  %v1751_v57 = vld [vmem:[#allocation2 + $0x210] sm:$0xff] }
0x1087   :  { %2509 = vmatpush3.msra.mxu0 %v1318_v58  ;;  %2540 = vmatprep.subr.mxu1 %v1751_v57  ;;  %v1749_v58 = vld [vmem:[#allocation2 + $0x200] sm:$0xff] }
0x1088   :  { %2644 = vpow2.f32 %v1301_v16  ;;  %2541 = vmatpush3.msra.mxu1 %v1751_v57  ;;  %v1748_v16 = vld [vmem:[#allocation2 + $0x1f8] sm:$0xff] }
0x108b   :  { %v1499_v34 = vpop.xlane.xlu0 %1498 }
0x108c   :  { %v1503_v2 = vsub.f32 %v1495_v49, %v1499_v34 }
0x108e   :  { %v1505_v3 = vmul.f32 1.442695, %v1503_v2 }
0x108f   :  { %v1502_v31 = vpop.xlane.xlu0 %1501 }
0x1090   :  { %v1504_v59 = vsub.f32 %v1496_v51, %v1502_v31 }
0x1092   :  { %v1507_v14 = vmul.f32 1.442695, %v1504_v59 }
0x1093   :  { %v2643_v60 = vpop.eup %2642 }
0x1094   :  { %2646 = vpow2.f32 %v1507_v14  ;;  %v1308_v61 = vsel %vm322_vm3, %v2643_v60, 0.0 }
0x1095   :  { %v2645_v62 = vpop.eup %2644  ;;  %1309 = vadd.xlane.f32.xlu0 %v1308_v61  ;;  %2648 = vpow2.f32 %v1505_v3 }
0x1096   :  { %v1305_v63 = vsel %vm322_vm3, %v2645_v62, 0.0 }
0x1097   :  { %1306 = vadd.xlane.f32.xlu1 %v1305_v63  ;;  %v2245_v63 = vld [vmem:[#allocation2 + $0x1e8] ss:$0 sm:$0xff] }
0x10a1   :  { %v2647_v0 = vpop.eup %2646 }
0x10a2   :  { %v1512_v1 = vsel %vm322_vm3, %v2647_v0, 0.0  ;;  %v2649_v4 = vpop.eup %2648 }
0x10a3   :  { %1513 = vadd.xlane.f32.xlu0 %v1512_v1  ;;  %v1509_v5 = vsel %vm322_vm3, %v2649_v4, 0.0  ;;  %v2246_v1 = vld [vmem:[#allocation2 + $0x1f0] ss:$0 sm:$0xff] }
0x10a8   :  { %1521 = vrot.lane.b32.xlu1 %v2875_v27, %s2730_s26  ;;  %v1618_v27 = vld [vmem:[#allocation2 + $0x1d0] sm:$0xff] }
0x10b9   :  { %1315 = vrot.lane.b32.xlu0 %v2877_v29, %s2727_s1 }
0x10cc   :  { %1510 = vadd.xlane.f32.xlu1 %v1509_v5 }
0x10dd   :  { %1519 = vrot.lane.b32.xlu1 %v2877_v29, %s2730_s26  ;;  %v1616_v29 = vld [vmem:[#allocation2 + $0x1c0] sm:$0xff] }
0x111e   :  { %v1310_v6 = vpop.xlane.xlu0 %1309 }
0x111f   :  { %2650 = vrcp.f32 %v1310_v6 }
0x1120   :  { %v1307_v7 = vpop.xlane.xlu1 %1306 }
0x1121   :  { %2652 = vrcp.f32 %v1307_v7 }
0x1124   :  { %v1522_v15 = vpop.permute.xlu1 %1521 }
0x112c   :  { %v1514_v8 = vpop.xlane.xlu0 %1513  ;;  %v2651_v9 = vpop.eup %2650 }
0x112d   :  { %v1314_v13 = vmul.f32 %v2651_v9, %v2643_v60  ;;  %2654 = vrcp.f32 %v1514_v8  ;;  %v1863_v8 = vld [vmem:[#allocation2 + $0x258] sm:$0xff]  ;;  %v1862_v9 = vld [vmem:[#allocation2 + $0x250] sm:$0xff] }
0x112e   :  { %v2653_v10 = vpop.eup %2652 }
0x112f   :  { %v1313_v11 = vmul.f32 %v2653_v10, %v2645_v62  ;;  %v1861_v10 = vld [vmem:[#allocation2 + $0x248] sm:$0xff] }
0x1130   :  { %v1316_v12 = vpop.permute.xlu0 %1315 }
0x1131   :  { %2510 = vmatprep.subr.mxu0 %v1316_v12  ;;  %2512 = vmatprep.mubr.msk.f32.mxu0 %vm322_vm3, %v1313_v11  ;;  %v1860_v11 = vld [vmem:[#allocation2 + $0x240] sm:$0xff] }
0x1132   :  { %2511 = vmatpush3.msra.mxu0 %v1316_v12  ;;  %v1859_v12 = vld [vmem:[#allocation2 + $0x238] sm:$0xff] }
0x1133   :  { %2513 = vmatmul.mubr.msk.f32.vlgmr.msra.gmra.mxu0 %vm322_vm3, %v1314_v13  ;;  %2522 = vmatprep.subr.mxu0 %v1522_v15  ;;  %v1858_v13 = vld [vmem:[#allocation2 + $0x230] sm:$0xff] }
0x1134   :  { %2523 = vmatpush3.msra.mxu0 %v1522_v15  ;;  %v1857_v15 = vld [vmem:[#allocation2 + $0x228] sm:$0xff] }
0x113a   :  { %v2655_v20 = vpop.eup %2654 }
0x113b   :  { %v1518_v25 = vmul.f32 %v2655_v20, %v2647_v0 }
0x1155   :  { %v1511_v17 = vpop.xlane.xlu1 %1510 }
0x1156   :  { %2656 = vrcp.f32 %v1511_v17  ;;  %v1856_v17 = vld [vmem:[#allocation2 + $0x220] sm:$0xff] }
0x1159   :  { %v1520_v18 = vpop.permute.xlu1 %1519 }
0x115a   :  { %2524 = vmatprep.subr.mxu0 %v1520_v18 }
0x115b   :  { %2525 = vmatpush3.msra.mxu0 %v1520_v18  ;;  %v2247_v18 = vld [vmem:[#allocation2 + $0x218] ss:$0 sm:$0xff] }
0x115c   :  { %2529 = vmatprep.subr.mxu0 %v1619_v26 }
0x1163   :  { %v2657_v22 = vpop.eup %2656 }
0x1164   :  { %v1517_v23 = vmul.f32 %v2657_v22, %v2649_v4 }
0x1166   :  { %2526 = vmatprep.mubr.msk.f32.mxu0 %vm322_vm3, %v1517_v23 }
0x1167   :  { %2527 = vmatmul.mubr.msk.f32.vlgmr.msra.gmra.mxu0 %vm322_vm3, %v1518_v25 }
0x1168   :  { %2530 = vmatpush3.msra.mxu0 %v1619_v26 }
0x1169   :  { %2531 = vmatprep.subr.mxu0 %v1618_v27 }
0x116a   :  { %2532 = vmatpush3.msra.mxu0 %v1618_v27 }
0x116b   :  { %2533 = vmatprep.subr.mxu0 %v1617_v28 }
0x116c   :  { %2534 = vmatpush3.msra.mxu0 %v1617_v28 }
0x116d   :  { %2535 = vmatprep.subr.mxu0 %v1616_v29 }
0x116e   :  { %2536 = vmatpush3.msra.mxu0 %v1616_v29 }
0x116f   :  { %2551 = vmatprep.subr.mxu0 %v1863_v8 }
0x11f3   :  { %v2514_v30 = vpop.f32.mrf.mxu0 }
0x11f5   :  { %v1393_v32 = vpop.f32.mrf.mxu0 }
0x1227   :  { %v2528_v21 = vpop.f32.mrf.mxu0 }
0x1228   :  { %1610 = vrot.lane.b32.xlu1 %v2528_v21, %s2731_s27 }
0x1229   :  { %v1597_v33 = vpop.f32.mrf.mxu0 }
0x122a   :  { %1608 = vrot.lane.b32.xlu0 %v1597_v33, %s2731_s27 }
0x129a   :  { %v1611_v35 = vpop.permute.xlu1 %1610 }
0x129b   :  { %v1615_v38 = vsel %vm322_vm3, %v2514_v30, %v1611_v35 }
0x129c   :  { %v1609_v36 = vpop.permute.xlu0 %1608 }
0x129d   :  { %v1614_v37 = vsel %vm322_vm3, %v1393_v32, %v1609_v36 }
0x129e   :  { %2537 = vmatprep.mubr.msk.f32.mxu0 %vm171_vm2, %v1614_v37 }
0x129f   :  { %2538 = vmatmul.mubr.msk.f32.vlgmr.msra.gmra.mxu0 %vm171_vm2, %v1615_v38 }
0x12a0   :  { %2552 = vmatpush3.msra.mxu0 %v1863_v8 }
0x12a1   :  { %2553 = vmatprep.subr.mxu0 %v1862_v9 }
0x12a2   :  { %2554 = vmatpush3.msra.mxu0 %v1862_v9  ;;  %v2254_v9 = vld [vmem:[#allocation2 + $0x270] ss:$0 sm:$0xff] }
0x12a3   :  { %2555 = vmatprep.subr.mxu0 %v1861_v10 }
0x12a4   :  { %2556 = vmatpush3.msra.mxu0 %v1861_v10 }
0x12a5   :  { %2557 = vmatprep.subr.mxu0 %v1860_v11 }
0x12a6   :  { %2558 = vmatpush3.msra.mxu0 %v1860_v11 }
0x12a7   :  { %2559 = vmatprep.subr.mxu0 %v1859_v12 }
0x12a8   :  { %2560 = vmatpush3.msra.mxu0 %v1859_v12 }
0x12a9   :  { %2561 = vmatprep.subr.mxu0 %v1858_v13 }
0x12aa   :  { %2562 = vmatpush3.msra.mxu0 %v1858_v13 }
0x12ab   :  { %2563 = vmatprep.subr.mxu0 %v1857_v15 }
0x12ac   :  { %2564 = vmatpush3.msra.mxu0 %v1857_v15 }
0x12ad   :  { %2565 = vmatprep.subr.mxu0 %v1856_v17 }
0x12ae   :  { %2566 = vmatpush3.msra.mxu0 %v1856_v17 }
0x135f   :  { %v2539_v40 = vpop.f32.mrf.mxu0 }
0x1360   :  { %v1703_v41 = vadd.f32 %v2539_v40, %v2242_v39 }
0x1361   :  { %v1697_v42 = vpop.f32.mrf.mxu0 }
0x1362   :  { %v1698_v43 = vadd.f32 %v2242_v39, %v1697_v42  ;;  %v1707_v44 = vadd.f32 %v1703_v41, %v2869_v24 }
0x1364   :  { %v1713_v45 = vsel %vm171_vm2, %v1707_v44, 0.0  ;;  %v1706_v46 = vadd.f32 %v1698_v43, %v2867_v19  ;;  %v1750_v19 = vld [vmem:[#allocation2 + $0x208] sm:$0xff] }
0x1365   :  { %1714 = vadd.xlane.f32.xlu1 %v1713_v45  ;;  %2542 = vmatprep.subr.mxu1 %v1750_v19  ;;  %v2250_v45 = vld [vmem:[#allocation2 + $0x260] ss:$0 sm:$0xff] }
0x1366   :  { %v1710_v47 = vsel %vm171_vm2, %v1706_v46, 0.0  ;;  %2543 = vmatpush3.msra.mxu1 %v1750_v19 }
0x1367   :  { %1711 = vadd.xlane.f32.xlu0 %v1710_v47  ;;  %2544 = vmatprep.subr.mxu1 %v1749_v58 }
0x1368   :  { %2545 = vmatpush3.msra.mxu1 %v1749_v58 }
0x1369   :  { %2546 = vmatprep.subr.mxu1 %v1748_v16 }
0x136a   :  { %2547 = vmatpush3.msra.mxu1 %v1748_v16 }
0x13ee   :  { %v1715_v48 = vpop.xlane.xlu1 %1714 }
0x13ef   :  { %v1717_v49 = vmul.f32 0.03125, %v1715_v48 }
0x13f0   :  { %v1712_v50 = vpop.xlane.xlu0 %1711 }
0x13f1   :  { %v1716_v51 = vmul.f32 0.03125, %v1712_v50  ;;  %v1719_v52 = vsub.f32 %v1707_v44, %v1717_v49 }
0x13f3   :  { %v1718_v53 = vsub.f32 %v1706_v46, %v1716_v51  ;;  %v1721_v56 = vmul.f32 %v1719_v52, %v1719_v52 }
0x13f5   :  { %v1720_v54 = vmul.f32 %v1718_v53, %v1718_v53  ;;  %v1725_v24 = vsel %vm171_vm2, %v1721_v56, 0.0 }
0x13f7   :  { %v1722_v55 = vsel %vm171_vm2, %v1720_v54, 0.0 }
0x13f8   :  { %1723 = vadd.xlane.f32.xlu0 %v1722_v55 }
0x13fc   :  { %1726 = vadd.xlane.f32.xlu0 %v1725_v24 }
0x1481   :  { %v1724_v34 = vpop.xlane.xlu0 %1723 }
0x1482   :  { %v1728_v31 = vmul.f32 0.03125, %v1724_v34 }
0x1484   :  { %v1730_v59 = vadd.f32 1e-12, %v1728_v31 }
0x1485   :  { %v1727_v14 = vpop.xlane.xlu0 %1726 }
0x1486   :  { %2658 = vrsqrt.f32 %v1730_v59  ;;  %v1729_v60 = vmul.f32 0.03125, %v1727_v14  ;;  %v2000_v59 = vld [vmem:[#allocation2 + $0x290] sm:$0xff]  ;;  %v2732_v14 = vmov 0.0  }
0x1487   :  { %2570 = vmatprep.subr.mxu1 %v2732_v14 }
0x1488   :  { %v1731_v61 = vadd.f32 1e-12, %v1729_v60  ;;  %v1999_v60 = vld [vmem:[#allocation2 + $0x288] sm:$0xff] }
0x148a   :  { %2660 = vrsqrt.f32 %v1731_v61  ;;  %v1998_v61 = vld [vmem:[#allocation2 + $0x280] sm:$0xff] }
0x1493   :  { %v2659_v62 = vpop.eup %2658 }
0x1494   :  { %v1734_v0 = vmul.f32 %v2659_v62, %v1718_v53  ;;  %v1997_v62 = vld [vmem:[#allocation2 + $0x278] sm:$0xff] }
0x1496   :  { %v1740_v2 = vmul.f32 %v2245_v63, %v1734_v0 }
0x1497   :  { %v2661_v3 = vpop.eup %2660 }
0x1498   :  { %v1735_v4 = vmul.f32 %v2661_v3, %v1719_v52  ;;  %v2941_v5 = vadd.f32 %v2246_v1, %v1740_v2 }
0x149a   :  { %v1741_v6 = vmul.f32 %v2245_v63, %v1735_v4  ;;  %2548 = vmatprep.mubr.msk.f32.mxu1 %vm171_vm2, %v2941_v5 }
0x149c   :  { %v1747_v7 = vadd.f32 %v2246_v1, %v1741_v6  ;;  %v2253_v6 = vld [vmem:[#allocation2 + $0x268] ss:$0 sm:$0xff] }
0x149e   :  { %2549 = vmatmul.mubr.msk.f32.vlgmr.msra.gmra.mxu1 %vm171_vm2, %v1747_v7 }
0x149f   :  { %2578 = vmatprep.mubr.msk.f32.mxu1 %vm2733_vm5, %v2732_v14  ;;  %2571 = vmatpush3.msra.mxu1 %v2000_v59 }
0x14a0   :  { %2572 = vmatprep.subr.mxu1 %v2732_v14 }
0x14a1   :  { %2573 = vmatpush3.msra.mxu1 %v1999_v60 }
0x14a2   :  { %2574 = vmatprep.subr.mxu1 %v2732_v14 }
0x14a3   :  { %2575 = vmatpush3.msra.mxu1 %v1998_v61 }
0x14a4   :  { %2576 = vmatprep.subr.mxu1 %v2732_v14 }
0x14a5   :  { %2577 = vmatpush3.msra.mxu1 %v1997_v62 }
0x14a6   :  { %2581 = vmatprep.subr.mxu1 %v2732_v14 }
0x155e   :  { %v2550_v20 = vpop.f32.mrf.mxu1 }
0x155f   :  { %v1835_v22 = vadd.f32 %v2550_v20, %v2247_v18  ;;  %v2083_v20 = vld [vmem:[#allocation2 + $0x2b8] sm:$0xff] }
0x1560   :  { %v1829_v23 = vpop.f32.mrf.mxu1 }
0x1561   :  { %v1839_v25 = vmul.f32 %v1835_v22, %v1835_v22  ;;  %v1830_v26 = vadd.f32 %v2247_v18, %v1829_v23  ;;  %v2081_v23 = vld [vmem:[#allocation2 + $0x2a8] sm:$0xff] }
0x1563   :  { %v1841_v27 = vmul.f32 %v1839_v25, %v1835_v22  ;;  %v1838_v28 = vmul.f32 %v1830_v26, %v1830_v26  ;;  %v2080_v25 = vld [vmem:[#allocation2 + $0x2a0] sm:$0xff] }
0x1565   :  { %v1843_v29 = vmul.f32 0.044715, %v1841_v27  ;;  %v1840_v30 = vmul.f32 %v1838_v28, %v1830_v26 }
0x1567   :  { %v1845_v32 = vadd.f32 %v1843_v29, %v1835_v22  ;;  %v1842_v21 = vmul.f32 0.044715, %v1840_v30 }
0x1569   :  { %v1847_v33 = vmul.f32 0.7978846, %v1845_v32  ;;  %v1844_v35 = vadd.f32 %v1842_v21, %v1830_v26  ;;  %v2257_v32 = vld [vmem:[#allocation2 + $0x2c0] ss:$0 sm:$0xff] }
0x156b   :  { %2662 = vtanh.f32 %v1847_v33  ;;  %v1846_v36 = vmul.f32 0.7978846, %v1844_v35 }
0x156d   :  { %2664 = vtanh.f32 %v1846_v36 }
0x1578   :  { %v2663_v37 = vpop.eup %2662 }
0x1579   :  { %v1851_v38 = vadd.f32 1.0, %v2663_v37 }
0x157a   :  { %v2665_v39 = vpop.eup %2664 }
0x157b   :  { %v1850_v40 = vadd.f32 1.0, %v2665_v39  ;;  %v1853_v41 = vmul.f32 0.5, %v1851_v38 }
0x157d   :  { %v1852_v42 = vmul.f32 0.5, %v1850_v40  ;;  %v1855_v44 = vmul.f32 %v1853_v41, %v1835_v22  ;;  %v2082_v22 = vld [vmem:[#allocation2 + $0x2b0] sm:$0xff] }
0x157f   :  { %v1854_v43 = vmul.f32 %v1852_v42, %v1830_v26  ;;  %v2255_v26 = vld [vmem:[#allocation2 + $0x298] ss:$0 sm:$0xff] }
0x1581   :  { %2567 = vmatprep.mubr.msk.f32.mxu0 %vm986_vm4, %v1854_v43 }
0x1582   :  { %2568 = vmatmul.mubr.msk.f32.vlgmr.msra.gmra.mxu0 %vm986_vm4, %v1855_v44 }
0x1642   :  { %v2569_v46 = vpop.f32.mrf.mxu0 }
0x1643   :  { %v1947_v47 = vadd.f32 %v2569_v46, %v2250_v45 }
0x1644   :  { %v1941_v48 = vpop.f32.mrf.mxu0 }
0x1645   :  { %v1942_v49 = vadd.f32 %v2250_v45, %v1941_v48  ;;  %v1951_v50 = vadd.f32 %v1947_v47, %v1747_v7 }
0x1647   :  { %v1957_v51 = vsel %vm171_vm2, %v1951_v50, 0.0  ;;  %v1950_v52 = vadd.f32 %v1942_v49, %v2941_v5 }
0x1648   :  { %1958 = vadd.xlane.f32.xlu1 %v1957_v51 }
0x1649   :  { %v1954_v53 = vsel %vm171_vm2, %v1950_v52, 0.0 }
0x164a   :  { %1955 = vadd.xlane.f32.xlu0 %v1954_v53 }
0x16d1   :  { %v1959_v54 = vpop.xlane.xlu1 %1958 }
0x16d2   :  { %v1961_v55 = vmul.f32 0.03125, %v1959_v54 }
0x16d3   :  { %v1956_v56 = vpop.xlane.xlu0 %1955 }
0x16d4   :  { %v1963_v24 = vsub.f32 %v1951_v50, %v1961_v55  ;;  %v1960_v57 = vmul.f32 0.03125, %v1956_v56 }
0x16d6   :  { %v1962_v19 = vsub.f32 %v1950_v52, %v1960_v57  ;;  %v1965_v58 = vmul.f32 %v1963_v24, %v1963_v24 }
0x16d8   :  { %v1969_v16 = vsel %vm171_vm2, %v1965_v58, 0.0  ;;  %v1964_v34 = vmul.f32 %v1962_v19, %v1962_v19 }
0x16d9   :  { %1970 = vadd.xlane.f32.xlu1 %v1969_v16 }
0x16da   :  { %v1966_v31 = vsel %vm171_vm2, %v1964_v34, 0.0 }
0x16db   :  { %1967 = vadd.xlane.f32.xlu0 %v1966_v31 }
0x1762   :  { %v1971_v63 = vpop.xlane.xlu1 %1970 }
0x1763   :  { %v1973_v0 = vmul.f32 0.03125, %v1971_v63 }
0x1764   :  { %v1968_v1 = vpop.xlane.xlu0 %1967 }
0x1765   :  { %v1975_v2 = vadd.f32 1e-12, %v1973_v0  ;;  %v1972_v3 = vmul.f32 0.03125, %v1968_v1 }
0x1767   :  { %2666 = vrsqrt.f32 %v1975_v2  ;;  %v1974_v4 = vadd.f32 1e-12, %v1972_v3 }
0x1769   :  { %2668 = vrsqrt.f32 %v1974_v4 }
0x1774   :  { %v2667_v5 = vpop.eup %2666 }
0x1775   :  { %v1979_v7 = vmul.f32 %v2667_v5, %v1963_v24 }
0x1776   :  { %v2669_v8 = vpop.eup %2668 }
0x1777   :  { %v1978_v10 = vmul.f32 %v2669_v8, %v1962_v19  ;;  %v1985_v11 = vmul.f32 %v2253_v6, %v1979_v7 }
0x1779   :  { %v1984_v12 = vmul.f32 %v2253_v6, %v1978_v10  ;;  %v1991_v13 = vadd.f32 %v2254_v9, %v1985_v11 }
0x177b   :  { %v1990_v15 = vadd.f32 %v2254_v9, %v1984_v12  ;;  %v1993_v17 = vrot.slane %v1991_v13, 7 }
0x177d   :  { %v1996_v18 = vsel %vm1995_vm6, %v1990_v15, %v1993_v17 }
0x177e   :  { %2579 = vmatmul.mubr.msk.f32.vlgmr.msra.gmra.mxu1 %vm171_vm2, %v1996_v18 }
0x177f   :  { %2589 = vmatprep.mubr.msk.f32.mxu1 %vm2733_vm5, %v2732_v14  ;;  %2582 = vmatpush3.msra.mxu1 %v2083_v20 }
0x1780   :  { %2583 = vmatprep.subr.mxu1 %v2732_v14 }
0x1781   :  { %2584 = vmatpush3.msra.mxu1 %v2082_v22 }
0x1782   :  { %2585 = vmatprep.subr.mxu1 %v2732_v14 }
0x1783   :  { %2586 = vmatpush3.msra.mxu1 %v2081_v23 }
0x1784   :  { %2587 = vmatprep.subr.mxu1 %v2732_v14 }
0x1785   :  { %2588 = vmatpush3.msra.mxu1 %v2080_v25 }
0x183e   :  { %v2075_v27 = vpop.f32.mrf.mxu1 }
0x183f   :  { %v2076_v28 = vadd.f32 %v2255_v26, %v2075_v27 }
0x1840   :  { %v2580_v29 = vpop.f32.mrf.mxu1 }
0x1841   :  { %2670 = vtanh.f32 %v2076_v28 }
0x184e   :  { %v2671_v30 = vpop.eup %2670 }
0x184f   :  { %2590 = vmatmul.mubr.msk.f32.vlgmr.msra.gmra.mxu1 %vm171_vm2, %v2671_v30 }
0x190f   :  { %v2158_v21 = vpop.f32.mrf.mxu1 }
0x1910   :  { %v2159_v33 = vadd.f32 %v2257_v32, %v2158_v21 }
0x1911   :  { %v2591_v35 = vpop.f32.mrf.mxu1 }
0x1912   :  { %v2163_v36 = vsel %vm2162_vm7, %v2159_v33, -inf }
0x1913   :  { %2164 = vmax.xlane.f32.xlu1 %v2163_v36 }
0x199c   :  { %v2165_v37 = vpop.xlane.xlu1 %2164 }
0x199d   :  { %v2166_v38 = vsub.f32 %v2159_v33, %v2165_v37 }
0x199f   :  { %v2167_v39 = vmul.f32 1.442695, %v2166_v38 }
0x19a1   :  { %2672 = vpow2.f32 %v2167_v39 }
0x19ae   :  { %v2673_v40 = vpop.eup %2672 }
0x19af   :  { %v2169_v41 = vsel %vm2162_vm7, %v2673_v40, 0.0 }
0x19b0   :  { %2170 = vadd.xlane.f32.xlu0 %v2169_v41 }
0x1a39   :  { %v2171_v42 = vpop.xlane.xlu0 %2170 }
0x1a3a   :  { %2674 = vrcp.f32 %v2171_v42 }
0x1a47   :  { %v2675_v43 = vpop.eup %2674 }
0x1a48   :  { %v2173_v44 = vmul.f32 %v2675_v43, %v2673_v40 }
0x1a4a   :  { %2174 = vst.msk [vmem:[#allocation5] sm:$0x3] %vm2162_vm7, %v2173_v44 }
0x1a4b   :  { %2707 = shalt.err (!%p2704_p9)
}
0x1a4c   :  { %2184 = dma.vmem_to_hbm [thread:$0]  %s2182_s29, 32, %s2966_s3, [#allocation4]  }
0x1a4d   :  { %2718 = dma.done.wait [#allocation4], 32  }
0x1a4e   :  { %2719 = vsyncadd [#allocation4], 4294967264 }
0x1a4f   :  { %2188 = vsyncpa [#allocation3], 1 }
0x1a50   :  { %2189 = vsyncpa [#allocation4], 1 }

</bundles_post_ra>
